<compile_context>
chip_gen: v6e
topology: v6e:2x2x1
jax: 0.10.0
libtpu: 0.0.40
codegen_flags: <defaults>
</compile_context>

<pallas_src>
import jax
import jax.numpy as jnp
from jax.experimental import pallas as pl
from jax.experimental.pallas import tpu as pltpu


def _device_defaults():
    """Per-TPU-generation slab target / VMEM budget / megacore hint."""
    kind = ""
    try:
        kind = jax.devices()[0].device_kind.lower()
    except Exception:
        pass
    if "v7" in kind:
        # v7x: 64 MiB physical VMEM, 2 TensorCores per chip.
        return dict(target_bytes=12 << 20, vmem_limit=48 << 20, even_grid=True)
    # v5e / v6e (and default): 128 MiB physical VMEM, single TensorCore.
    # The explicit limit matters most on v5e (scoped default is only 16 MiB).
    return dict(target_bytes=16 << 20, vmem_limit=64 << 20, even_grid=False)


def _pick_tiles(B, e_in, e_out, d, itemsize, target_bytes, even_grid):
    """Pick (batch tile TB per grid step, in-kernel row chunk CH)."""
    row_bytes = (e_in + e_out) * d * itemsize  # in + out bytes per batch row
    # Row chunk: keep the E_in preloaded (CH, D) f32 slices (reused across all
    # E_out outputs) plus one accumulator within a modest number of vregs.
    ch = (32 * 1024) // max(4 * e_in * d, 1)
    ch = max(8, min(256, (ch // 8) * 8))
    # Batch tile: a multi-MiB slab per grid step; double-buffered in+out stays
    # comfortably under the per-generation VMEM limit.
    tb = max(ch, (target_bytes // row_bytes) // ch * ch)
    if tb >= B:
        return B, min(ch, B)
    steps = -(-B // tb)
    if even_grid and steps % 2 == 1:
        # v7x: the parallel grid axis shards across 2 TensorCores; an odd
        # number of steps leaves one core with up to ~2x the work.
        steps += 1
    # Balance the blocks across the chosen number of steps (avoids a tiny
    # ragged last block doing a full slab of wasted compute).
    tb = -(-B // steps)
    tb = -(-tb // ch) * ch
    tb = min(tb, B)
    ch = min(ch, tb)
    return tb, ch


def _make_kernel(e_in, e_out, d, tb, ch):
    n_full = tb // ch
    tail = tb - n_full * ch

    def rows_body(w_ref, x_ref, o_ref, r0, nrows):
        # Load the E_in lane-groups for these rows once; each is reused across
        # all E_out outputs (E_in FMAs per output element, VPU-only; bf16
        # inputs are upcast to f32 so the math also works on v5e's f32 VPU).
        xs = [
            x_ref[pl.ds(r0, nrows), pl.ds(i * d, d)].astype(jnp.float32)
            for i in range(e_in)
        ]
        for o in range(e_out):
            acc = w_ref[0, o] * xs[0]
            for i in range(1, e_in):
                acc = acc + w_ref[i, o] * xs[i]
            o_ref[pl.ds(r0, nrows), pl.ds(o * d, d)] = acc.astype(o_ref.dtype)

    def kernel(w_ref, x_ref, o_ref):
        # w_ref: (E_in, E_out) f32, whole table resident in SMEM (scalar reads
        #        broadcast onto the VPU).
        # x_ref: (TB, E_in*D) VMEM block;  o_ref: (TB, E_out*D) VMEM block.
        if n_full > 0:
            @pl.loop(0, n_full)
            def _(c):
                r0 = c * ch
                if ch % 8 == 0:
                    r0 = pl.multiple_of(r0, 8)
                rows_body(w_ref, x_ref, o_ref, r0, ch)
        if tail > 0:
            rows_body(w_ref, x_ref, o_ref, n_full * ch, tail)

    return kernel


def residual_projection(inputs: jax.Array, weight: jax.Array) -> jax.Array:
    """inputs: (B, E_in, D); weight: (E_in, E_out) -> (B, E_out, D)."""
    B, e_in, d = inputs.shape
    e_in_w, e_out = weight.shape
    assert e_in == e_in_w, (e_in, e_in_w)

    cfg = _device_defaults()
    itemsize = jnp.dtype(inputs.dtype).itemsize
    tb, ch = _pick_tiles(
        B, e_in, e_out, d, itemsize, cfg["target_bytes"], cfg["even_grid"]
    )
    steps = -(-B // tb)  # ragged last batch block is handled/masked by Pallas

    # Free, contiguous reshape (no HBM copy): (b, i, d) -> (b, i*D + d) keeps
    # the lane axis at the full E_in*D width.
    x2 = inputs.reshape(B, e_in * d)
    w32 = weight.astype(jnp.float32)

    out2 = pl.pallas_call(
        _make_kernel(e_in, e_out, d, tb, ch),
        out_shape=jax.ShapeDtypeStruct((B, e_out * d), inputs.dtype),
        grid=(steps,),
        in_specs=[
            # Tiny weight table: whole array resident in SMEM.
            pl.BlockSpec(memory_space=pltpu.MemorySpace.SMEM),
            # Input slab: tiled along the batch (sublane) axis only; lane axis
            # is the full E_in*D width -> lane-dense DMA and stores.
            pl.BlockSpec((tb, e_in * d), lambda b: (b, 0)),
        ],
        out_specs=pl.BlockSpec((tb, e_out * d), lambda b: (b, 0)),
        compiler_params=pltpu.CompilerParams(
            dimension_semantics=("parallel",),
            vmem_limit_bytes=cfg["vmem_limit"],
        ),
    )(w32, x2)

    # Free reshape back to the module's (B, E_out, D) layout.
    return out2.reshape(B, e_out, d)


def init_weight(key, num_emb_in: int, num_emb_out: int) -> jax.Array:
    # Mimic nn.init.kaiming_uniform_ (a=0, fan_in = weight.size(1) = num_emb_out):
    # bound = sqrt(6 / fan_in).  Initialization-only; kernel math is independent.
    bound = (6.0 / num_emb_out) ** 0.5
    return jax.random.uniform(
        key, (num_emb_in, num_emb_out), minval=-bound, maxval=bound,
        dtype=jnp.float32,
    )


if __name__ == "__main__":
    key = jax.random.PRNGKey(0)
    k1, k2, k3, k4 = jax.random.split(key, 4)

    # Small shapes consistent with the module: (batch, num_emb_in, emb_dim).
    B, E_in, E_out, D = 2, 8, 16, 32
    x = jax.random.normal(k1, (B, E_in, D), dtype=jnp.float32)
    w = init_weight(k2, E_in, E_out)
    out = jax.block_until_ready(residual_projection(x, w))
    ref = jnp.einsum("bid,io->bod", x, w, precision=jax.lax.Precision.HIGHEST)
    assert out.shape == (B, E_out, D)
    assert jnp.allclose(out, ref, atol=1e-5, rtol=1e-5), \
        float(jnp.max(jnp.abs(out - ref)))

    # Second shape with a lane-aligned embedding dim (D % 128 == 0).
    B2, E2_in, E2_out, D2 = 16, 4, 8, 128
    x2 = jax.random.normal(k3, (B2, E2_in, D2), dtype=jnp.float32)
    w2 = init_weight(k4, E2_in, E2_out)
    out2 = jax.block_until_ready(residual_projection(x2, w2))
    ref2 = jnp.einsum("bid,io->bod", x2, w2, precision=jax.lax.Precision.HIGHEST)
    assert jnp.allclose(out2, ref2, atol=1e-5, rtol=1e-5), \
        float(jnp.max(jnp.abs(out2 - ref2)))

    print("KERNEL_OK")
</pallas_src>

<mosaic_0001>
module attributes {stable_mosaic.version = 11 : i64} {
  func.func @kernel(%arg0: i32, %arg1: memref<8x16xf32, #tpu.memory_space<smem>>, %arg2: memref<2x256xf32, #tpu.memory_space<vmem>>, %arg3: memref<2x512xf32, #tpu.memory_space<vmem>>) attributes {dimension_semantics = [#tpu.dimension_semantics<parallel>], iteration_bounds = array<i64: 1>, scalar_prefetch = 0 : i64, scratch_operands = 0 : i64, tpu.core_type = #tpu.core_type<tc>, window_params = [{transform_indices = @transform_0, window_bounds = array<i64: 8, 16>}, {transform_indices = @transform_1, window_bounds = array<i64: 2, 256>}, {transform_indices = @transform_2, window_bounds = array<i64: 2, 512>}]} {
    %c0_i32 = arith.constant 0 : i32
    %c1_i32 = arith.constant 1 : i32
    %0 = arith.muli %c0_i32, %c1_i32 : i32
    %c0_i32_0 = arith.constant 0 : i32
    %1 = arith.addi %c0_i32_0, %0 : i32
    %c2_i32 = arith.constant 2 : i32
    %2 = arith.muli %1, %c2_i32 : i32
    %3 = arith.index_cast %2 : i32 to index
    %c0 = arith.constant 0 : index
    %4 = vector.load %arg2[%3, %c0] : memref<2x256xf32, #tpu.memory_space<vmem>>, vector<2x32xf32>
    %5 = arith.index_cast %2 : i32 to index
    %c32 = arith.constant 32 : index
    %6 = vector.load %arg2[%5, %c32] : memref<2x256xf32, #tpu.memory_space<vmem>>, vector<2x32xf32>
    %7 = arith.index_cast %2 : i32 to index
    %c64 = arith.constant 64 : index
    %8 = vector.load %arg2[%7, %c64] : memref<2x256xf32, #tpu.memory_space<vmem>>, vector<2x32xf32>
    %9 = arith.index_cast %2 : i32 to index
    %c96 = arith.constant 96 : index
    %10 = vector.load %arg2[%9, %c96] : memref<2x256xf32, #tpu.memory_space<vmem>>, vector<2x32xf32>
    %11 = arith.index_cast %2 : i32 to index
    %c128 = arith.constant 128 : index
    %12 = vector.load %arg2[%11, %c128] : memref<2x256xf32, #tpu.memory_space<vmem>>, vector<2x32xf32>
    %13 = arith.index_cast %2 : i32 to index
    %c160 = arith.constant 160 : index
    %14 = vector.load %arg2[%13, %c160] : memref<2x256xf32, #tpu.memory_space<vmem>>, vector<2x32xf32>
    %15 = arith.index_cast %2 : i32 to index
    %c192 = arith.constant 192 : index
    %16 = vector.load %arg2[%15, %c192] : memref<2x256xf32, #tpu.memory_space<vmem>>, vector<2x32xf32>
    %17 = arith.index_cast %2 : i32 to index
    %c224 = arith.constant 224 : index
    %18 = vector.load %arg2[%17, %c224] : memref<2x256xf32, #tpu.memory_space<vmem>>, vector<2x32xf32>
    %c0_1 = arith.constant 0 : index
    %c0_2 = arith.constant 0 : index
    %19 = memref.load %arg1[%c0_1, %c0_2] : memref<8x16xf32, #tpu.memory_space<smem>>
    %20 = vector.broadcast %19 : f32 to vector<2x32xf32>
    %21 = arith.mulf %20, %4 : vector<2x32xf32>
    %c1 = arith.constant 1 : index
    %c0_3 = arith.constant 0 : index
    %22 = memref.load %arg1[%c1, %c0_3] : memref<8x16xf32, #tpu.memory_space<smem>>
    %23 = vector.broadcast %22 : f32 to vector<2x32xf32>
    %24 = arith.mulf %23, %6 : vector<2x32xf32>
    %25 = arith.addf %21, %24 : vector<2x32xf32>
    %c2 = arith.constant 2 : index
    %c0_4 = arith.constant 0 : index
    %26 = memref.load %arg1[%c2, %c0_4] : memref<8x16xf32, #tpu.memory_space<smem>>
    %27 = vector.broadcast %26 : f32 to vector<2x32xf32>
    %28 = arith.mulf %27, %8 : vector<2x32xf32>
    %29 = arith.addf %25, %28 : vector<2x32xf32>
    %c3 = arith.constant 3 : index
    %c0_5 = arith.constant 0 : index
    %30 = memref.load %arg1[%c3, %c0_5] : memref<8x16xf32, #tpu.memory_space<smem>>
    %31 = vector.broadcast %30 : f32 to vector<2x32xf32>
    %32 = arith.mulf %31, %10 : vector<2x32xf32>
    %33 = arith.addf %29, %32 : vector<2x32xf32>
    %c4 = arith.constant 4 : index
    %c0_6 = arith.constant 0 : index
    %34 = memref.load %arg1[%c4, %c0_6] : memref<8x16xf32, #tpu.memory_space<smem>>
    %35 = vector.broadcast %34 : f32 to vector<2x32xf32>
    %36 = arith.mulf %35, %12 : vector<2x32xf32>
    %37 = arith.addf %33, %36 : vector<2x32xf32>
    %c5 = arith.constant 5 : index
    %c0_7 = arith.constant 0 : index
    %38 = memref.load %arg1[%c5, %c0_7] : memref<8x16xf32, #tpu.memory_space<smem>>
    %39 = vector.broadcast %38 : f32 to vector<2x32xf32>
    %40 = arith.mulf %39, %14 : vector<2x32xf32>
    %41 = arith.addf %37, %40 : vector<2x32xf32>
    %c6 = arith.constant 6 : index
    %c0_8 = arith.constant 0 : index
    %42 = memref.load %arg1[%c6, %c0_8] : memref<8x16xf32, #tpu.memory_space<smem>>
    %43 = vector.broadcast %42 : f32 to vector<2x32xf32>
    %44 = arith.mulf %43, %16 : vector<2x32xf32>
    %45 = arith.addf %41, %44 : vector<2x32xf32>
    %c7 = arith.constant 7 : index
    %c0_9 = arith.constant 0 : index
    %46 = memref.load %arg1[%c7, %c0_9] : memref<8x16xf32, #tpu.memory_space<smem>>
    %47 = vector.broadcast %46 : f32 to vector<2x32xf32>
    %48 = arith.mulf %47, %18 : vector<2x32xf32>
    %49 = arith.addf %45, %48 : vector<2x32xf32>
    %50 = arith.index_cast %2 : i32 to index
    %c0_10 = arith.constant 0 : index
    %51 = vector.load %arg3[%50, %c0_10] : memref<2x512xf32, #tpu.memory_space<vmem>>, vector<2x32xf32>
    tpu.vector_store %arg3[%50, %c0_10], %49 {strides = array<i32>} : memref<2x512xf32, #tpu.memory_space<vmem>>, vector<2x32xf32>,
    %c0_11 = arith.constant 0 : index
    %c1_12 = arith.constant 1 : index
    %52 = memref.load %arg1[%c0_11, %c1_12] : memref<8x16xf32, #tpu.memory_space<smem>>
    %53 = vector.broadcast %52 : f32 to vector<2x32xf32>
    %54 = arith.mulf %53, %4 : vector<2x32xf32>
    %c1_13 = arith.constant 1 : index
    %c1_14 = arith.constant 1 : index
    %55 = memref.load %arg1[%c1_13, %c1_14] : memref<8x16xf32, #tpu.memory_space<smem>>
    %56 = vector.broadcast %55 : f32 to vector<2x32xf32>
    %57 = arith.mulf %56, %6 : vector<2x32xf32>
    %58 = arith.addf %54, %57 : vector<2x32xf32>
    %c2_15 = arith.constant 2 : index
    %c1_16 = arith.constant 1 : index
    %59 = memref.load %arg1[%c2_15, %c1_16] : memref<8x16xf32, #tpu.memory_space<smem>>
    %60 = vector.broadcast %59 : f32 to vector<2x32xf32>
    %61 = arith.mulf %60, %8 : vector<2x32xf32>
    %62 = arith.addf %58, %61 : vector<2x32xf32>
    %c3_17 = arith.constant 3 : index
    %c1_18 = arith.constant 1 : index
    %63 = memref.load %arg1[%c3_17, %c1_18] : memref<8x16xf32, #tpu.memory_space<smem>>
    %64 = vector.broadcast %63 : f32 to vector<2x32xf32>
    %65 = arith.mulf %64, %10 : vector<2x32xf32>
    %66 = arith.addf %62, %65 : vector<2x32xf32>
    %c4_19 = arith.constant 4 : index
    %c1_20 = arith.constant 1 : index
    %67 = memref.load %arg1[%c4_19, %c1_20] : memref<8x16xf32, #tpu.memory_space<smem>>
    %68 = vector.broadcast %67 : f32 to vector<2x32xf32>
    %69 = arith.mulf %68, %12 : vector<2x32xf32>
    %70 = arith.addf %66, %69 : vector<2x32xf32>
    %c5_21 = arith.constant 5 : index
    %c1_22 = arith.constant 1 : index
    %71 = memref.load %arg1[%c5_21, %c1_22] : memref<8x16xf32, #tpu.memory_space<smem>>
    %72 = vector.broadcast %71 : f32 to vector<2x32xf32>
    %73 = arith.mulf %72, %14 : vector<2x32xf32>
    %74 = arith.addf %70, %73 : vector<2x32xf32>
    %c6_23 = arith.constant 6 : index
    %c1_24 = arith.constant 1 : index
    %75 = memref.load %arg1[%c6_23, %c1_24] : memref<8x16xf32, #tpu.memory_space<smem>>
    %76 = vector.broadcast %75 : f32 to vector<2x32xf32>
    %77 = arith.mulf %76, %16 : vector<2x32xf32>
    %78 = arith.addf %74, %77 : vector<2x32xf32>
    %c7_25 = arith.constant 7 : index
    %c1_26 = arith.constant 1 : index
    %79 = memref.load %arg1[%c7_25, %c1_26] : memref<8x16xf32, #tpu.memory_space<smem>>
    %80 = vector.broadcast %79 : f32 to vector<2x32xf32>
    %81 = arith.mulf %80, %18 : vector<2x32xf32>
    %82 = arith.addf %78, %81 : vector<2x32xf32>
    %83 = arith.index_cast %2 : i32 to index
    %c32_27 = arith.constant 32 : index
    %84 = vector.load %arg3[%83, %c32_27] : memref<2x512xf32, #tpu.memory_space<vmem>>, vector<2x32xf32>
    tpu.vector_store %arg3[%83, %c32_27], %82 {strides = array<i32>} : memref<2x512xf32, #tpu.memory_space<vmem>>, vector<2x32xf32>,
    %c0_28 = arith.constant 0 : index
    %c2_29 = arith.constant 2 : index
    %85 = memref.load %arg1[%c0_28, %c2_29] : memref<8x16xf32, #tpu.memory_space<smem>>
    %86 = vector.broadcast %85 : f32 to vector<2x32xf32>
    %87 = arith.mulf %86, %4 : vector<2x32xf32>
    %c1_30 = arith.constant 1 : index
    %c2_31 = arith.constant 2 : index
    %88 = memref.load %arg1[%c1_30, %c2_31] : memref<8x16xf32, #tpu.memory_space<smem>>
    %89 = vector.broadcast %88 : f32 to vector<2x32xf32>
    %90 = arith.mulf %89, %6 : vector<2x32xf32>
    %91 = arith.addf %87, %90 : vector<2x32xf32>
    %c2_32 = arith.constant 2 : index
    %c2_33 = arith.constant 2 : index
    %92 = memref.load %arg1[%c2_32, %c2_33] : memref<8x16xf32, #tpu.memory_space<smem>>
    %93 = vector.broadcast %92 : f32 to vector<2x32xf32>
    %94 = arith.mulf %93, %8 : vector<2x32xf32>
    %95 = arith.addf %91, %94 : vector<2x32xf32>
    %c3_34 = arith.constant 3 : index
    %c2_35 = arith.constant 2 : index
    %96 = memref.load %arg1[%c3_34, %c2_35] : memref<8x16xf32, #tpu.memory_space<smem>>
    %97 = vector.broadcast %96 : f32 to vector<2x32xf32>
    %98 = arith.mulf %97, %10 : vector<2x32xf32>
    %99 = arith.addf %95, %98 : vector<2x32xf32>
    %c4_36 = arith.constant 4 : index
    %c2_37 = arith.constant 2 : index
    %100 = memref.load %arg1[%c4_36, %c2_37] : memref<8x16xf32, #tpu.memory_space<smem>>
    %101 = vector.broadcast %100 : f32 to vector<2x32xf32>
    %102 = arith.mulf %101, %12 : vector<2x32xf32>
    %103 = arith.addf %99, %102 : vector<2x32xf32>
    %c5_38 = arith.constant 5 : index
    %c2_39 = arith.constant 2 : index
    %104 = memref.load %arg1[%c5_38, %c2_39] : memref<8x16xf32, #tpu.memory_space<smem>>
    %105 = vector.broadcast %104 : f32 to vector<2x32xf32>
    %106 = arith.mulf %105, %14 : vector<2x32xf32>
    %107 = arith.addf %103, %106 : vector<2x32xf32>
    %c6_40 = arith.constant 6 : index
    %c2_41 = arith.constant 2 : index
    %108 = memref.load %arg1[%c6_40, %c2_41] : memref<8x16xf32, #tpu.memory_space<smem>>
    %109 = vector.broadcast %108 : f32 to vector<2x32xf32>
    %110 = arith.mulf %109, %16 : vector<2x32xf32>
    %111 = arith.addf %107, %110 : vector<2x32xf32>
    %c7_42 = arith.constant 7 : index
    %c2_43 = arith.constant 2 : index
    %112 = memref.load %arg1[%c7_42, %c2_43] : memref<8x16xf32, #tpu.memory_space<smem>>
    %113 = vector.broadcast %112 : f32 to vector<2x32xf32>
    %114 = arith.mulf %113, %18 : vector<2x32xf32>
    %115 = arith.addf %111, %114 : vector<2x32xf32>
    %116 = arith.index_cast %2 : i32 to index
    %c64_44 = arith.constant 64 : index
    %117 = vector.load %arg3[%116, %c64_44] : memref<2x512xf32, #tpu.memory_space<vmem>>, vector<2x32xf32>
    tpu.vector_store %arg3[%116, %c64_44], %115 {strides = array<i32>} : memref<2x512xf32, #tpu.memory_space<vmem>>, vector<2x32xf32>,
    %c0_45 = arith.constant 0 : index
    %c3_46 = arith.constant 3 : index
    %118 = memref.load %arg1[%c0_45, %c3_46] : memref<8x16xf32, #tpu.memory_space<smem>>
    %119 = vector.broadcast %118 : f32 to vector<2x32xf32>
    %120 = arith.mulf %119, %4 : vector<2x32xf32>
    %c1_47 = arith.constant 1 : index
    %c3_48 = arith.constant 3 : index
    %121 = memref.load %arg1[%c1_47, %c3_48] : memref<8x16xf32, #tpu.memory_space<smem>>
    %122 = vector.broadcast %121 : f32 to vector<2x32xf32>
    %123 = arith.mulf %122, %6 : vector<2x32xf32>
    %124 = arith.addf %120, %123 : vector<2x32xf32>
    %c2_49 = arith.constant 2 : index
    %c3_50 = arith.constant 3 : index
    %125 = memref.load %arg1[%c2_49, %c3_50] : memref<8x16xf32, #tpu.memory_space<smem>>
    %126 = vector.broadcast %125 : f32 to vector<2x32xf32>
    %127 = arith.mulf %126, %8 : vector<2x32xf32>
    %128 = arith.addf %124, %127 : vector<2x32xf32>
    %c3_51 = arith.constant 3 : index
    %c3_52 = arith.constant 3 : index
    %129 = memref.load %arg1[%c3_51, %c3_52] : memref<8x16xf32, #tpu.memory_space<smem>>
    %130 = vector.broadcast %129 : f32 to vector<2x32xf32>
    %131 = arith.mulf %130, %10 : vector<2x32xf32>
    %132 = arith.addf %128, %131 : vector<2x32xf32>
    %c4_53 = arith.constant 4 : index
    %c3_54 = arith.constant 3 : index
    %133 = memref.load %arg1[%c4_53, %c3_54] : memref<8x16xf32, #tpu.memory_space<smem>>
    %134 = vector.broadcast %133 : f32 to vector<2x32xf32>
    %135 = arith.mulf %134, %12 : vector<2x32xf32>
    %136 = arith.addf %132, %135 : vector<2x32xf32>
    %c5_55 = arith.constant 5 : index
    %c3_56 = arith.constant 3 : index
    %137 = memref.load %arg1[%c5_55, %c3_56] : memref<8x16xf32, #tpu.memory_space<smem>>
    %138 = vector.broadcast %137 : f32 to vector<2x32xf32>
    %139 = arith.mulf %138, %14 : vector<2x32xf32>
    %140 = arith.addf %136, %139 : vector<2x32xf32>
    %c6_57 = arith.constant 6 : index
    %c3_58 = arith.constant 3 : index
    %141 = memref.load %arg1[%c6_57, %c3_58] : memref<8x16xf32, #tpu.memory_space<smem>>
    %142 = vector.broadcast %141 : f32 to vector<2x32xf32>
    %143 = arith.mulf %142, %16 : vector<2x32xf32>
    %144 = arith.addf %140, %143 : vector<2x32xf32>
    %c7_59 = arith.constant 7 : index
    %c3_60 = arith.constant 3 : index
    %145 = memref.load %arg1[%c7_59, %c3_60] : memref<8x16xf32, #tpu.memory_space<smem>>
    %146 = vector.broadcast %145 : f32 to vector<2x32xf32>
    %147 = arith.mulf %146, %18 : vector<2x32xf32>
    %148 = arith.addf %144, %147 : vector<2x32xf32>
    %149 = arith.index_cast %2 : i32 to index
    %c96_61 = arith.constant 96 : index
    %150 = vector.load %arg3[%149, %c96_61] : memref<2x512xf32, #tpu.memory_space<vmem>>, vector<2x32xf32>
    tpu.vector_store %arg3[%149, %c96_61], %148 {strides = array<i32>} : memref<2x512xf32, #tpu.memory_space<vmem>>, vector<2x32xf32>,
    %c0_62 = arith.constant 0 : index
    %c4_63 = arith.constant 4 : index
    %151 = memref.load %arg1[%c0_62, %c4_63] : memref<8x16xf32, #tpu.memory_space<smem>>
    %152 = vector.broadcast %151 : f32 to vector<2x32xf32>
    %153 = arith.mulf %152, %4 : vector<2x32xf32>
    %c1_64 = arith.constant 1 : index
    %c4_65 = arith.constant 4 : index
    %154 = memref.load %arg1[%c1_64, %c4_65] : memref<8x16xf32, #tpu.memory_space<smem>>
    %155 = vector.broadcast %154 : f32 to vector<2x32xf32>
    %156 = arith.mulf %155, %6 : vector<2x32xf32>
    %157 = arith.addf %153, %156 : vector<2x32xf32>
    %c2_66 = arith.constant 2 : index
    %c4_67 = arith.constant 4 : index
    %158 = memref.load %arg1[%c2_66, %c4_67] : memref<8x16xf32, #tpu.memory_space<smem>>
    %159 = vector.broadcast %158 : f32 to vector<2x32xf32>
    %160 = arith.mulf %159, %8 : vector<2x32xf32>
    %161 = arith.addf %157, %160 : vector<2x32xf32>
    %c3_68 = arith.constant 3 : index
    %c4_69 = arith.constant 4 : index
    %162 = memref.load %arg1[%c3_68, %c4_69] : memref<8x16xf32, #tpu.memory_space<smem>>
    %163 = vector.broadcast %162 : f32 to vector<2x32xf32>
    %164 = arith.mulf %163, %10 : vector<2x32xf32>
    %165 = arith.addf %161, %164 : vector<2x32xf32>
    %c4_70 = arith.constant 4 : index
    %c4_71 = arith.constant 4 : index
    %166 = memref.load %arg1[%c4_70, %c4_71] : memref<8x16xf32, #tpu.memory_space<smem>>
    %167 = vector.broadcast %166 : f32 to vector<2x32xf32>
    %168 = arith.mulf %167, %12 : vector<2x32xf32>
    %169 = arith.addf %165, %168 : vector<2x32xf32>
    %c5_72 = arith.constant 5 : index
    %c4_73 = arith.constant 4 : index
    %170 = memref.load %arg1[%c5_72, %c4_73] : memref<8x16xf32, #tpu.memory_space<smem>>
    %171 = vector.broadcast %170 : f32 to vector<2x32xf32>
    %172 = arith.mulf %171, %14 : vector<2x32xf32>
    %173 = arith.addf %169, %172 : vector<2x32xf32>
    %c6_74 = arith.constant 6 : index
    %c4_75 = arith.constant 4 : index
    %174 = memref.load %arg1[%c6_74, %c4_75] : memref<8x16xf32, #tpu.memory_space<smem>>
    %175 = vector.broadcast %174 : f32 to vector<2x32xf32>
    %176 = arith.mulf %175, %16 : vector<2x32xf32>
    %177 = arith.addf %173, %176 : vector<2x32xf32>
    %c7_76 = arith.constant 7 : index
    %c4_77 = arith.constant 4 : index
    %178 = memref.load %arg1[%c7_76, %c4_77] : memref<8x16xf32, #tpu.memory_space<smem>>
    %179 = vector.broadcast %178 : f32 to vector<2x32xf32>
    %180 = arith.mulf %179, %18 : vector<2x32xf32>
    %181 = arith.addf %177, %180 : vector<2x32xf32>
    %182 = arith.index_cast %2 : i32 to index
    %c128_78 = arith.constant 128 : index
    %183 = vector.load %arg3[%182, %c128_78] : memref<2x512xf32, #tpu.memory_space<vmem>>, vector<2x32xf32>
    tpu.vector_store %arg3[%182, %c128_78], %181 {strides = array<i32>} : memref<2x512xf32, #tpu.memory_space<vmem>>, vector<2x32xf32>,
    %c0_79 = arith.constant 0 : index
    %c5_80 = arith.constant 5 : index
    %184 = memref.load %arg1[%c0_79, %c5_80] : memref<8x16xf32, #tpu.memory_space<smem>>
    %185 = vector.broadcast %184 : f32 to vector<2x32xf32>
    %186 = arith.mulf %185, %4 : vector<2x32xf32>
    %c1_81 = arith.constant 1 : index
    %c5_82 = arith.constant 5 : index
    %187 = memref.load %arg1[%c1_81, %c5_82] : memref<8x16xf32, #tpu.memory_space<smem>>
    %188 = vector.broadcast %187 : f32 to vector<2x32xf32>
    %189 = arith.mulf %188, %6 : vector<2x32xf32>
    %190 = arith.addf %186, %189 : vector<2x32xf32>
    %c2_83 = arith.constant 2 : index
    %c5_84 = arith.constant 5 : index
    %191 = memref.load %arg1[%c2_83, %c5_84] : memref<8x16xf32, #tpu.memory_space<smem>>
    %192 = vector.broadcast %191 : f32 to vector<2x32xf32>
    %193 = arith.mulf %192, %8 : vector<2x32xf32>
    %194 = arith.addf %190, %193 : vector<2x32xf32>
    %c3_85 = arith.constant 3 : index
    %c5_86 = arith.constant 5 : index
    %195 = memref.load %arg1[%c3_85, %c5_86] : memref<8x16xf32, #tpu.memory_space<smem>>
    %196 = vector.broadcast %195 : f32 to vector<2x32xf32>
    %197 = arith.mulf %196, %10 : vector<2x32xf32>
    %198 = arith.addf %194, %197 : vector<2x32xf32>
    %c4_87 = arith.constant 4 : index
    %c5_88 = arith.constant 5 : index
    %199 = memref.load %arg1[%c4_87, %c5_88] : memref<8x16xf32, #tpu.memory_space<smem>>
    %200 = vector.broadcast %199 : f32 to vector<2x32xf32>
    %201 = arith.mulf %200, %12 : vector<2x32xf32>
    %202 = arith.addf %198, %201 : vector<2x32xf32>
    %c5_89 = arith.constant 5 : index
    %c5_90 = arith.constant 5 : index
    %203 = memref.load %arg1[%c5_89, %c5_90] : memref<8x16xf32, #tpu.memory_space<smem>>
    %204 = vector.broadcast %203 : f32 to vector<2x32xf32>
    %205 = arith.mulf %204, %14 : vector<2x32xf32>
    %206 = arith.addf %202, %205 : vector<2x32xf32>
    %c6_91 = arith.constant 6 : index
    %c5_92 = arith.constant 5 : index
    %207 = memref.load %arg1[%c6_91, %c5_92] : memref<8x16xf32, #tpu.memory_space<smem>>
    %208 = vector.broadcast %207 : f32 to vector<2x32xf32>
    %209 = arith.mulf %208, %16 : vector<2x32xf32>
    %210 = arith.addf %206, %209 : vector<2x32xf32>
    %c7_93 = arith.constant 7 : index
    %c5_94 = arith.constant 5 : index
    %211 = memref.load %arg1[%c7_93, %c5_94] : memref<8x16xf32, #tpu.memory_space<smem>>
    %212 = vector.broadcast %211 : f32 to vector<2x32xf32>
    %213 = arith.mulf %212, %18 : vector<2x32xf32>
    %214 = arith.addf %210, %213 : vector<2x32xf32>
    %215 = arith.index_cast %2 : i32 to index
    %c160_95 = arith.constant 160 : index
    %216 = vector.load %arg3[%215, %c160_95] : memref<2x512xf32, #tpu.memory_space<vmem>>, vector<2x32xf32>
    tpu.vector_store %arg3[%215, %c160_95], %214 {strides = array<i32>} : memref<2x512xf32, #tpu.memory_space<vmem>>, vector<2x32xf32>,
    %c0_96 = arith.constant 0 : index
    %c6_97 = arith.constant 6 : index
    %217 = memref.load %arg1[%c0_96, %c6_97] : memref<8x16xf32, #tpu.memory_space<smem>>
    %218 = vector.broadcast %217 : f32 to vector<2x32xf32>
    %219 = arith.mulf %218, %4 : vector<2x32xf32>
    %c1_98 = arith.constant 1 : index
    %c6_99 = arith.constant 6 : index
    %220 = memref.load %arg1[%c1_98, %c6_99] : memref<8x16xf32, #tpu.memory_space<smem>>
    %221 = vector.broadcast %220 : f32 to vector<2x32xf32>
    %222 = arith.mulf %221, %6 : vector<2x32xf32>
    %223 = arith.addf %219, %222 : vector<2x32xf32>
    %c2_100 = arith.constant 2 : index
    %c6_101 = arith.constant 6 : index
    %224 = memref.load %arg1[%c2_100, %c6_101] : memref<8x16xf32, #tpu.memory_space<smem>>
    %225 = vector.broadcast %224 : f32 to vector<2x32xf32>
    %226 = arith.mulf %225, %8 : vector<2x32xf32>
    %227 = arith.addf %223, %226 : vector<2x32xf32>
    %c3_102 = arith.constant 3 : index
    %c6_103 = arith.constant 6 : index
    %228 = memref.load %arg1[%c3_102, %c6_103] : memref<8x16xf32, #tpu.memory_space<smem>>
    %229 = vector.broadcast %228 : f32 to vector<2x32xf32>
    %230 = arith.mulf %229, %10 : vector<2x32xf32>
    %231 = arith.addf %227, %230 : vector<2x32xf32>
    %c4_104 = arith.constant 4 : index
    %c6_105 = arith.constant 6 : index
    %232 = memref.load %arg1[%c4_104, %c6_105] : memref<8x16xf32, #tpu.memory_space<smem>>
    %233 = vector.broadcast %232 : f32 to vector<2x32xf32>
    %234 = arith.mulf %233, %12 : vector<2x32xf32>
    %235 = arith.addf %231, %234 : vector<2x32xf32>
    %c5_106 = arith.constant 5 : index
    %c6_107 = arith.constant 6 : index
    %236 = memref.load %arg1[%c5_106, %c6_107] : memref<8x16xf32, #tpu.memory_space<smem>>
    %237 = vector.broadcast %236 : f32 to vector<2x32xf32>
    %238 = arith.mulf %237, %14 : vector<2x32xf32>
    %239 = arith.addf %235, %238 : vector<2x32xf32>
    %c6_108 = arith.constant 6 : index
    %c6_109 = arith.constant 6 : index
    %240 = memref.load %arg1[%c6_108, %c6_109] : memref<8x16xf32, #tpu.memory_space<smem>>
    %241 = vector.broadcast %240 : f32 to vector<2x32xf32>
    %242 = arith.mulf %241, %16 : vector<2x32xf32>
    %243 = arith.addf %239, %242 : vector<2x32xf32>
    %c7_110 = arith.constant 7 : index
    %c6_111 = arith.constant 6 : index
    %244 = memref.load %arg1[%c7_110, %c6_111] : memref<8x16xf32, #tpu.memory_space<smem>>
    %245 = vector.broadcast %244 : f32 to vector<2x32xf32>
    %246 = arith.mulf %245, %18 : vector<2x32xf32>
    %247 = arith.addf %243, %246 : vector<2x32xf32>
    %248 = arith.index_cast %2 : i32 to index
    %c192_112 = arith.constant 192 : index
    %249 = vector.load %arg3[%248, %c192_112] : memref<2x512xf32, #tpu.memory_space<vmem>>, vector<2x32xf32>
    tpu.vector_store %arg3[%248, %c192_112], %247 {strides = array<i32>} : memref<2x512xf32, #tpu.memory_space<vmem>>, vector<2x32xf32>,
    %c0_113 = arith.constant 0 : index
    %c7_114 = arith.constant 7 : index
    %250 = memref.load %arg1[%c0_113, %c7_114] : memref<8x16xf32, #tpu.memory_space<smem>>
    %251 = vector.broadcast %250 : f32 to vector<2x32xf32>
    %252 = arith.mulf %251, %4 : vector<2x32xf32>
    %c1_115 = arith.constant 1 : index
    %c7_116 = arith.constant 7 : index
    %253 = memref.load %arg1[%c1_115, %c7_116] : memref<8x16xf32, #tpu.memory_space<smem>>
    %254 = vector.broadcast %253 : f32 to vector<2x32xf32>
    %255 = arith.mulf %254, %6 : vector<2x32xf32>
    %256 = arith.addf %252, %255 : vector<2x32xf32>
    %c2_117 = arith.constant 2 : index
    %c7_118 = arith.constant 7 : index
    %257 = memref.load %arg1[%c2_117, %c7_118] : memref<8x16xf32, #tpu.memory_space<smem>>
    %258 = vector.broadcast %257 : f32 to vector<2x32xf32>
    %259 = arith.mulf %258, %8 : vector<2x32xf32>
    %260 = arith.addf %256, %259 : vector<2x32xf32>
    %c3_119 = arith.constant 3 : index
    %c7_120 = arith.constant 7 : index
    %261 = memref.load %arg1[%c3_119, %c7_120] : memref<8x16xf32, #tpu.memory_space<smem>>
    %262 = vector.broadcast %261 : f32 to vector<2x32xf32>
    %263 = arith.mulf %262, %10 : vector<2x32xf32>
    %264 = arith.addf %260, %263 : vector<2x32xf32>
    %c4_121 = arith.constant 4 : index
    %c7_122 = arith.constant 7 : index
    %265 = memref.load %arg1[%c4_121, %c7_122] : memref<8x16xf32, #tpu.memory_space<smem>>
    %266 = vector.broadcast %265 : f32 to vector<2x32xf32>
    %267 = arith.mulf %266, %12 : vector<2x32xf32>
    %268 = arith.addf %264, %267 : vector<2x32xf32>
    %c5_123 = arith.constant 5 : index
    %c7_124 = arith.constant 7 : index
    %269 = memref.load %arg1[%c5_123, %c7_124] : memref<8x16xf32, #tpu.memory_space<smem>>
    %270 = vector.broadcast %269 : f32 to vector<2x32xf32>
    %271 = arith.mulf %270, %14 : vector<2x32xf32>
    %272 = arith.addf %268, %271 : vector<2x32xf32>
    %c6_125 = arith.constant 6 : index
    %c7_126 = arith.constant 7 : index
    %273 = memref.load %arg1[%c6_125, %c7_126] : memref<8x16xf32, #tpu.memory_space<smem>>
    %274 = vector.broadcast %273 : f32 to vector<2x32xf32>
    %275 = arith.mulf %274, %16 : vector<2x32xf32>
    %276 = arith.addf %272, %275 : vector<2x32xf32>
    %c7_127 = arith.constant 7 : index
    %c7_128 = arith.constant 7 : index
    %277 = memref.load %arg1[%c7_127, %c7_128] : memref<8x16xf32, #tpu.memory_space<smem>>
    %278 = vector.broadcast %277 : f32 to vector<2x32xf32>
    %279 = arith.mulf %278, %18 : vector<2x32xf32>
    %280 = arith.addf %276, %279 : vector<2x32xf32>
    %281 = arith.index_cast %2 : i32 to index
    %c224_129 = arith.constant 224 : index
    %282 = vector.load %arg3[%281, %c224_129] : memref<2x512xf32, #tpu.memory_space<vmem>>, vector<2x32xf32>
    tpu.vector_store %arg3[%281, %c224_129], %280 {strides = array<i32>} : memref<2x512xf32, #tpu.memory_space<vmem>>, vector<2x32xf32>,
    %c0_130 = arith.constant 0 : index
    %c8 = arith.constant 8 : index
    %283 = memref.load %arg1[%c0_130, %c8] : memref<8x16xf32, #tpu.memory_space<smem>>
    %284 = vector.broadcast %283 : f32 to vector<2x32xf32>
    %285 = arith.mulf %284, %4 : vector<2x32xf32>
    %c1_131 = arith.constant 1 : index
    %c8_132 = arith.constant 8 : index
    %286 = memref.load %arg1[%c1_131, %c8_132] : memref<8x16xf32, #tpu.memory_space<smem>>
    %287 = vector.broadcast %286 : f32 to vector<2x32xf32>
    %288 = arith.mulf %287, %6 : vector<2x32xf32>
    %289 = arith.addf %285, %288 : vector<2x32xf32>
    %c2_133 = arith.constant 2 : index
    %c8_134 = arith.constant 8 : index
    %290 = memref.load %arg1[%c2_133, %c8_134] : memref<8x16xf32, #tpu.memory_space<smem>>
    %291 = vector.broadcast %290 : f32 to vector<2x32xf32>
    %292 = arith.mulf %291, %8 : vector<2x32xf32>
    %293 = arith.addf %289, %292 : vector<2x32xf32>
    %c3_135 = arith.constant 3 : index
    %c8_136 = arith.constant 8 : index
    %294 = memref.load %arg1[%c3_135, %c8_136] : memref<8x16xf32, #tpu.memory_space<smem>>
    %295 = vector.broadcast %294 : f32 to vector<2x32xf32>
    %296 = arith.mulf %295, %10 : vector<2x32xf32>
    %297 = arith.addf %293, %296 : vector<2x32xf32>
    %c4_137 = arith.constant 4 : index
    %c8_138 = arith.constant 8 : index
    %298 = memref.load %arg1[%c4_137, %c8_138] : memref<8x16xf32, #tpu.memory_space<smem>>
    %299 = vector.broadcast %298 : f32 to vector<2x32xf32>
    %300 = arith.mulf %299, %12 : vector<2x32xf32>
    %301 = arith.addf %297, %300 : vector<2x32xf32>
    %c5_139 = arith.constant 5 : index
    %c8_140 = arith.constant 8 : index
    %302 = memref.load %arg1[%c5_139, %c8_140] : memref<8x16xf32, #tpu.memory_space<smem>>
    %303 = vector.broadcast %302 : f32 to vector<2x32xf32>
    %304 = arith.mulf %303, %14 : vector<2x32xf32>
    %305 = arith.addf %301, %304 : vector<2x32xf32>
    %c6_141 = arith.constant 6 : index
    %c8_142 = arith.constant 8 : index
    %306 = memref.load %arg1[%c6_141, %c8_142] : memref<8x16xf32, #tpu.memory_space<smem>>
    %307 = vector.broadcast %306 : f32 to vector<2x32xf32>
    %308 = arith.mulf %307, %16 : vector<2x32xf32>
    %309 = arith.addf %305, %308 : vector<2x32xf32>
    %c7_143 = arith.constant 7 : index
    %c8_144 = arith.constant 8 : index
    %310 = memref.load %arg1[%c7_143, %c8_144] : memref<8x16xf32, #tpu.memory_space<smem>>
    %311 = vector.broadcast %310 : f32 to vector<2x32xf32>
    %312 = arith.mulf %311, %18 : vector<2x32xf32>
    %313 = arith.addf %309, %312 : vector<2x32xf32>
    %314 = arith.index_cast %2 : i32 to index
    %c256 = arith.constant 256 : index
    %315 = vector.load %arg3[%314, %c256] : memref<2x512xf32, #tpu.memory_space<vmem>>, vector<2x32xf32>
    tpu.vector_store %arg3[%314, %c256], %313 {strides = array<i32>} : memref<2x512xf32, #tpu.memory_space<vmem>>, vector<2x32xf32>,
    %c0_145 = arith.constant 0 : index
    %c9 = arith.constant 9 : index
    %316 = memref.load %arg1[%c0_145, %c9] : memref<8x16xf32, #tpu.memory_space<smem>>
    %317 = vector.broadcast %316 : f32 to vector<2x32xf32>
    %318 = arith.mulf %317, %4 : vector<2x32xf32>
    %c1_146 = arith.constant 1 : index
    %c9_147 = arith.constant 9 : index
    %319 = memref.load %arg1[%c1_146, %c9_147] : memref<8x16xf32, #tpu.memory_space<smem>>
    %320 = vector.broadcast %319 : f32 to vector<2x32xf32>
    %321 = arith.mulf %320, %6 : vector<2x32xf32>
    %322 = arith.addf %318, %321 : vector<2x32xf32>
    %c2_148 = arith.constant 2 : index
    %c9_149 = arith.constant 9 : index
    %323 = memref.load %arg1[%c2_148, %c9_149] : memref<8x16xf32, #tpu.memory_space<smem>>
    %324 = vector.broadcast %323 : f32 to vector<2x32xf32>
    %325 = arith.mulf %324, %8 : vector<2x32xf32>
    %326 = arith.addf %322, %325 : vector<2x32xf32>
    %c3_150 = arith.constant 3 : index
    %c9_151 = arith.constant 9 : index
    %327 = memref.load %arg1[%c3_150, %c9_151] : memref<8x16xf32, #tpu.memory_space<smem>>
    %328 = vector.broadcast %327 : f32 to vector<2x32xf32>
    %329 = arith.mulf %328, %10 : vector<2x32xf32>
    %330 = arith.addf %326, %329 : vector<2x32xf32>
    %c4_152 = arith.constant 4 : index
    %c9_153 = arith.constant 9 : index
    %331 = memref.load %arg1[%c4_152, %c9_153] : memref<8x16xf32, #tpu.memory_space<smem>>
    %332 = vector.broadcast %331 : f32 to vector<2x32xf32>
    %333 = arith.mulf %332, %12 : vector<2x32xf32>
    %334 = arith.addf %330, %333 : vector<2x32xf32>
    %c5_154 = arith.constant 5 : index
    %c9_155 = arith.constant 9 : index
    %335 = memref.load %arg1[%c5_154, %c9_155] : memref<8x16xf32, #tpu.memory_space<smem>>
    %336 = vector.broadcast %335 : f32 to vector<2x32xf32>
    %337 = arith.mulf %336, %14 : vector<2x32xf32>
    %338 = arith.addf %334, %337 : vector<2x32xf32>
    %c6_156 = arith.constant 6 : index
    %c9_157 = arith.constant 9 : index
    %339 = memref.load %arg1[%c6_156, %c9_157] : memref<8x16xf32, #tpu.memory_space<smem>>
    %340 = vector.broadcast %339 : f32 to vector<2x32xf32>
    %341 = arith.mulf %340, %16 : vector<2x32xf32>
    %342 = arith.addf %338, %341 : vector<2x32xf32>
    %c7_158 = arith.constant 7 : index
    %c9_159 = arith.constant 9 : index
    %343 = memref.load %arg1[%c7_158, %c9_159] : memref<8x16xf32, #tpu.memory_space<smem>>
    %344 = vector.broadcast %343 : f32 to vector<2x32xf32>
    %345 = arith.mulf %344, %18 : vector<2x32xf32>
    %346 = arith.addf %342, %345 : vector<2x32xf32>
    %347 = arith.index_cast %2 : i32 to index
    %c288 = arith.constant 288 : index
    %348 = vector.load %arg3[%347, %c288] : memref<2x512xf32, #tpu.memory_space<vmem>>, vector<2x32xf32>
    tpu.vector_store %arg3[%347, %c288], %346 {strides = array<i32>} : memref<2x512xf32, #tpu.memory_space<vmem>>, vector<2x32xf32>,
    %c0_160 = arith.constant 0 : index
    %c10 = arith.constant 10 : index
    %349 = memref.load %arg1[%c0_160, %c10] : memref<8x16xf32, #tpu.memory_space<smem>>
    %350 = vector.broadcast %349 : f32 to vector<2x32xf32>
    %351 = arith.mulf %350, %4 : vector<2x32xf32>
    %c1_161 = arith.constant 1 : index
    %c10_162 = arith.constant 10 : index
    %352 = memref.load %arg1[%c1_161, %c10_162] : memref<8x16xf32, #tpu.memory_space<smem>>
    %353 = vector.broadcast %352 : f32 to vector<2x32xf32>
    %354 = arith.mulf %353, %6 : vector<2x32xf32>
    %355 = arith.addf %351, %354 : vector<2x32xf32>
    %c2_163 = arith.constant 2 : index
    %c10_164 = arith.constant 10 : index
    %356 = memref.load %arg1[%c2_163, %c10_164] : memref<8x16xf32, #tpu.memory_space<smem>>
    %357 = vector.broadcast %356 : f32 to vector<2x32xf32>
    %358 = arith.mulf %357, %8 : vector<2x32xf32>
    %359 = arith.addf %355, %358 : vector<2x32xf32>
    %c3_165 = arith.constant 3 : index
    %c10_166 = arith.constant 10 : index
    %360 = memref.load %arg1[%c3_165, %c10_166] : memref<8x16xf32, #tpu.memory_space<smem>>
    %361 = vector.broadcast %360 : f32 to vector<2x32xf32>
    %362 = arith.mulf %361, %10 : vector<2x32xf32>
    %363 = arith.addf %359, %362 : vector<2x32xf32>
    %c4_167 = arith.constant 4 : index
    %c10_168 = arith.constant 10 : index
    %364 = memref.load %arg1[%c4_167, %c10_168] : memref<8x16xf32, #tpu.memory_space<smem>>
    %365 = vector.broadcast %364 : f32 to vector<2x32xf32>
    %366 = arith.mulf %365, %12 : vector<2x32xf32>
    %367 = arith.addf %363, %366 : vector<2x32xf32>
    %c5_169 = arith.constant 5 : index
    %c10_170 = arith.constant 10 : index
    %368 = memref.load %arg1[%c5_169, %c10_170] : memref<8x16xf32, #tpu.memory_space<smem>>
    %369 = vector.broadcast %368 : f32 to vector<2x32xf32>
    %370 = arith.mulf %369, %14 : vector<2x32xf32>
    %371 = arith.addf %367, %370 : vector<2x32xf32>
    %c6_171 = arith.constant 6 : index
    %c10_172 = arith.constant 10 : index
    %372 = memref.load %arg1[%c6_171, %c10_172] : memref<8x16xf32, #tpu.memory_space<smem>>
    %373 = vector.broadcast %372 : f32 to vector<2x32xf32>
    %374 = arith.mulf %373, %16 : vector<2x32xf32>
    %375 = arith.addf %371, %374 : vector<2x32xf32>
    %c7_173 = arith.constant 7 : index
    %c10_174 = arith.constant 10 : index
    %376 = memref.load %arg1[%c7_173, %c10_174] : memref<8x16xf32, #tpu.memory_space<smem>>
    %377 = vector.broadcast %376 : f32 to vector<2x32xf32>
    %378 = arith.mulf %377, %18 : vector<2x32xf32>
    %379 = arith.addf %375, %378 : vector<2x32xf32>
    %380 = arith.index_cast %2 : i32 to index
    %c320 = arith.constant 320 : index
    %381 = vector.load %arg3[%380, %c320] : memref<2x512xf32, #tpu.memory_space<vmem>>, vector<2x32xf32>
    tpu.vector_store %arg3[%380, %c320], %379 {strides = array<i32>} : memref<2x512xf32, #tpu.memory_space<vmem>>, vector<2x32xf32>,
    %c0_175 = arith.constant 0 : index
    %c11 = arith.constant 11 : index
    %382 = memref.load %arg1[%c0_175, %c11] : memref<8x16xf32, #tpu.memory_space<smem>>
    %383 = vector.broadcast %382 : f32 to vector<2x32xf32>
    %384 = arith.mulf %383, %4 : vector<2x32xf32>
    %c1_176 = arith.constant 1 : index
    %c11_177 = arith.constant 11 : index
    %385 = memref.load %arg1[%c1_176, %c11_177] : memref<8x16xf32, #tpu.memory_space<smem>>
    %386 = vector.broadcast %385 : f32 to vector<2x32xf32>
    %387 = arith.mulf %386, %6 : vector<2x32xf32>
    %388 = arith.addf %384, %387 : vector<2x32xf32>
    %c2_178 = arith.constant 2 : index
    %c11_179 = arith.constant 11 : index
    %389 = memref.load %arg1[%c2_178, %c11_179] : memref<8x16xf32, #tpu.memory_space<smem>>
    %390 = vector.broadcast %389 : f32 to vector<2x32xf32>
    %391 = arith.mulf %390, %8 : vector<2x32xf32>
    %392 = arith.addf %388, %391 : vector<2x32xf32>
    %c3_180 = arith.constant 3 : index
    %c11_181 = arith.constant 11 : index
    %393 = memref.load %arg1[%c3_180, %c11_181] : memref<8x16xf32, #tpu.memory_space<smem>>
    %394 = vector.broadcast %393 : f32 to vector<2x32xf32>
    %395 = arith.mulf %394, %10 : vector<2x32xf32>
    %396 = arith.addf %392, %395 : vector<2x32xf32>
    %c4_182 = arith.constant 4 : index
    %c11_183 = arith.constant 11 : index
    %397 = memref.load %arg1[%c4_182, %c11_183] : memref<8x16xf32, #tpu.memory_space<smem>>
    %398 = vector.broadcast %397 : f32 to vector<2x32xf32>
    %399 = arith.mulf %398, %12 : vector<2x32xf32>
    %400 = arith.addf %396, %399 : vector<2x32xf32>
    %c5_184 = arith.constant 5 : index
    %c11_185 = arith.constant 11 : index
    %401 = memref.load %arg1[%c5_184, %c11_185] : memref<8x16xf32, #tpu.memory_space<smem>>
    %402 = vector.broadcast %401 : f32 to vector<2x32xf32>
    %403 = arith.mulf %402, %14 : vector<2x32xf32>
    %404 = arith.addf %400, %403 : vector<2x32xf32>
    %c6_186 = arith.constant 6 : index
    %c11_187 = arith.constant 11 : index
    %405 = memref.load %arg1[%c6_186, %c11_187] : memref<8x16xf32, #tpu.memory_space<smem>>
    %406 = vector.broadcast %405 : f32 to vector<2x32xf32>
    %407 = arith.mulf %406, %16 : vector<2x32xf32>
    %408 = arith.addf %404, %407 : vector<2x32xf32>
    %c7_188 = arith.constant 7 : index
    %c11_189 = arith.constant 11 : index
    %409 = memref.load %arg1[%c7_188, %c11_189] : memref<8x16xf32, #tpu.memory_space<smem>>
    %410 = vector.broadcast %409 : f32 to vector<2x32xf32>
    %411 = arith.mulf %410, %18 : vector<2x32xf32>
    %412 = arith.addf %408, %411 : vector<2x32xf32>
    %413 = arith.index_cast %2 : i32 to index
    %c352 = arith.constant 352 : index
    %414 = vector.load %arg3[%413, %c352] : memref<2x512xf32, #tpu.memory_space<vmem>>, vector<2x32xf32>
    tpu.vector_store %arg3[%413, %c352], %412 {strides = array<i32>} : memref<2x512xf32, #tpu.memory_space<vmem>>, vector<2x32xf32>,
    %c0_190 = arith.constant 0 : index
    %c12 = arith.constant 12 : index
    %415 = memref.load %arg1[%c0_190, %c12] : memref<8x16xf32, #tpu.memory_space<smem>>
    %416 = vector.broadcast %415 : f32 to vector<2x32xf32>
    %417 = arith.mulf %416, %4 : vector<2x32xf32>
    %c1_191 = arith.constant 1 : index
    %c12_192 = arith.constant 12 : index
    %418 = memref.load %arg1[%c1_191, %c12_192] : memref<8x16xf32, #tpu.memory_space<smem>>
    %419 = vector.broadcast %418 : f32 to vector<2x32xf32>
    %420 = arith.mulf %419, %6 : vector<2x32xf32>
    %421 = arith.addf %417, %420 : vector<2x32xf32>
    %c2_193 = arith.constant 2 : index
    %c12_194 = arith.constant 12 : index
    %422 = memref.load %arg1[%c2_193, %c12_194] : memref<8x16xf32, #tpu.memory_space<smem>>
    %423 = vector.broadcast %422 : f32 to vector<2x32xf32>
    %424 = arith.mulf %423, %8 : vector<2x32xf32>
    %425 = arith.addf %421, %424 : vector<2x32xf32>
    %c3_195 = arith.constant 3 : index
    %c12_196 = arith.constant 12 : index
    %426 = memref.load %arg1[%c3_195, %c12_196] : memref<8x16xf32, #tpu.memory_space<smem>>
    %427 = vector.broadcast %426 : f32 to vector<2x32xf32>
    %428 = arith.mulf %427, %10 : vector<2x32xf32>
    %429 = arith.addf %425, %428 : vector<2x32xf32>
    %c4_197 = arith.constant 4 : index
    %c12_198 = arith.constant 12 : index
    %430 = memref.load %arg1[%c4_197, %c12_198] : memref<8x16xf32, #tpu.memory_space<smem>>
    %431 = vector.broadcast %430 : f32 to vector<2x32xf32>
    %432 = arith.mulf %431, %12 : vector<2x32xf32>
    %433 = arith.addf %429, %432 : vector<2x32xf32>
    %c5_199 = arith.constant 5 : index
    %c12_200 = arith.constant 12 : index
    %434 = memref.load %arg1[%c5_199, %c12_200] : memref<8x16xf32, #tpu.memory_space<smem>>
    %435 = vector.broadcast %434 : f32 to vector<2x32xf32>
    %436 = arith.mulf %435, %14 : vector<2x32xf32>
    %437 = arith.addf %433, %436 : vector<2x32xf32>
    %c6_201 = arith.constant 6 : index
    %c12_202 = arith.constant 12 : index
    %438 = memref.load %arg1[%c6_201, %c12_202] : memref<8x16xf32, #tpu.memory_space<smem>>
    %439 = vector.broadcast %438 : f32 to vector<2x32xf32>
    %440 = arith.mulf %439, %16 : vector<2x32xf32>
    %441 = arith.addf %437, %440 : vector<2x32xf32>
    %c7_203 = arith.constant 7 : index
    %c12_204 = arith.constant 12 : index
    %442 = memref.load %arg1[%c7_203, %c12_204] : memref<8x16xf32, #tpu.memory_space<smem>>
    %443 = vector.broadcast %442 : f32 to vector<2x32xf32>
    %444 = arith.mulf %443, %18 : vector<2x32xf32>
    %445 = arith.addf %441, %444 : vector<2x32xf32>
    %446 = arith.index_cast %2 : i32 to index
    %c384 = arith.constant 384 : index
    %447 = vector.load %arg3[%446, %c384] : memref<2x512xf32, #tpu.memory_space<vmem>>, vector<2x32xf32>
    tpu.vector_store %arg3[%446, %c384], %445 {strides = array<i32>} : memref<2x512xf32, #tpu.memory_space<vmem>>, vector<2x32xf32>,
    %c0_205 = arith.constant 0 : index
    %c13 = arith.constant 13 : index
    %448 = memref.load %arg1[%c0_205, %c13] : memref<8x16xf32, #tpu.memory_space<smem>>
    %449 = vector.broadcast %448 : f32 to vector<2x32xf32>
    %450 = arith.mulf %449, %4 : vector<2x32xf32>
    %c1_206 = arith.constant 1 : index
    %c13_207 = arith.constant 13 : index
    %451 = memref.load %arg1[%c1_206, %c13_207] : memref<8x16xf32, #tpu.memory_space<smem>>
    %452 = vector.broadcast %451 : f32 to vector<2x32xf32>
    %453 = arith.mulf %452, %6 : vector<2x32xf32>
    %454 = arith.addf %450, %453 : vector<2x32xf32>
    %c2_208 = arith.constant 2 : index
    %c13_209 = arith.constant 13 : index
    %455 = memref.load %arg1[%c2_208, %c13_209] : memref<8x16xf32, #tpu.memory_space<smem>>
    %456 = vector.broadcast %455 : f32 to vector<2x32xf32>
    %457 = arith.mulf %456, %8 : vector<2x32xf32>
    %458 = arith.addf %454, %457 : vector<2x32xf32>
    %c3_210 = arith.constant 3 : index
    %c13_211 = arith.constant 13 : index
    %459 = memref.load %arg1[%c3_210, %c13_211] : memref<8x16xf32, #tpu.memory_space<smem>>
    %460 = vector.broadcast %459 : f32 to vector<2x32xf32>
    %461 = arith.mulf %460, %10 : vector<2x32xf32>
    %462 = arith.addf %458, %461 : vector<2x32xf32>
    %c4_212 = arith.constant 4 : index
    %c13_213 = arith.constant 13 : index
    %463 = memref.load %arg1[%c4_212, %c13_213] : memref<8x16xf32, #tpu.memory_space<smem>>
    %464 = vector.broadcast %463 : f32 to vector<2x32xf32>
    %465 = arith.mulf %464, %12 : vector<2x32xf32>
    %466 = arith.addf %462, %465 : vector<2x32xf32>
    %c5_214 = arith.constant 5 : index
    %c13_215 = arith.constant 13 : index
    %467 = memref.load %arg1[%c5_214, %c13_215] : memref<8x16xf32, #tpu.memory_space<smem>>
    %468 = vector.broadcast %467 : f32 to vector<2x32xf32>
    %469 = arith.mulf %468, %14 : vector<2x32xf32>
    %470 = arith.addf %466, %469 : vector<2x32xf32>
    %c6_216 = arith.constant 6 : index
    %c13_217 = arith.constant 13 : index
    %471 = memref.load %arg1[%c6_216, %c13_217] : memref<8x16xf32, #tpu.memory_space<smem>>
    %472 = vector.broadcast %471 : f32 to vector<2x32xf32>
    %473 = arith.mulf %472, %16 : vector<2x32xf32>
    %474 = arith.addf %470, %473 : vector<2x32xf32>
    %c7_218 = arith.constant 7 : index
    %c13_219 = arith.constant 13 : index
    %475 = memref.load %arg1[%c7_218, %c13_219] : memref<8x16xf32, #tpu.memory_space<smem>>
    %476 = vector.broadcast %475 : f32 to vector<2x32xf32>
    %477 = arith.mulf %476, %18 : vector<2x32xf32>
    %478 = arith.addf %474, %477 : vector<2x32xf32>
    %479 = arith.index_cast %2 : i32 to index
    %c416 = arith.constant 416 : index
    %480 = vector.load %arg3[%479, %c416] : memref<2x512xf32, #tpu.memory_space<vmem>>, vector<2x32xf32>
    tpu.vector_store %arg3[%479, %c416], %478 {strides = array<i32>} : memref<2x512xf32, #tpu.memory_space<vmem>>, vector<2x32xf32>,
    %c0_220 = arith.constant 0 : index
    %c14 = arith.constant 14 : index
    %481 = memref.load %arg1[%c0_220, %c14] : memref<8x16xf32, #tpu.memory_space<smem>>
    %482 = vector.broadcast %481 : f32 to vector<2x32xf32>
    %483 = arith.mulf %482, %4 : vector<2x32xf32>
    %c1_221 = arith.constant 1 : index
    %c14_222 = arith.constant 14 : index
    %484 = memref.load %arg1[%c1_221, %c14_222] : memref<8x16xf32, #tpu.memory_space<smem>>
    %485 = vector.broadcast %484 : f32 to vector<2x32xf32>
    %486 = arith.mulf %485, %6 : vector<2x32xf32>
    %487 = arith.addf %483, %486 : vector<2x32xf32>
    %c2_223 = arith.constant 2 : index
    %c14_224 = arith.constant 14 : index
    %488 = memref.load %arg1[%c2_223, %c14_224] : memref<8x16xf32, #tpu.memory_space<smem>>
    %489 = vector.broadcast %488 : f32 to vector<2x32xf32>
    %490 = arith.mulf %489, %8 : vector<2x32xf32>
    %491 = arith.addf %487, %490 : vector<2x32xf32>
    %c3_225 = arith.constant 3 : index
    %c14_226 = arith.constant 14 : index
    %492 = memref.load %arg1[%c3_225, %c14_226] : memref<8x16xf32, #tpu.memory_space<smem>>
    %493 = vector.broadcast %492 : f32 to vector<2x32xf32>
    %494 = arith.mulf %493, %10 : vector<2x32xf32>
    %495 = arith.addf %491, %494 : vector<2x32xf32>
    %c4_227 = arith.constant 4 : index
    %c14_228 = arith.constant 14 : index
    %496 = memref.load %arg1[%c4_227, %c14_228] : memref<8x16xf32, #tpu.memory_space<smem>>
    %497 = vector.broadcast %496 : f32 to vector<2x32xf32>
    %498 = arith.mulf %497, %12 : vector<2x32xf32>
    %499 = arith.addf %495, %498 : vector<2x32xf32>
    %c5_229 = arith.constant 5 : index
    %c14_230 = arith.constant 14 : index
    %500 = memref.load %arg1[%c5_229, %c14_230] : memref<8x16xf32, #tpu.memory_space<smem>>
    %501 = vector.broadcast %500 : f32 to vector<2x32xf32>
    %502 = arith.mulf %501, %14 : vector<2x32xf32>
    %503 = arith.addf %499, %502 : vector<2x32xf32>
    %c6_231 = arith.constant 6 : index
    %c14_232 = arith.constant 14 : index
    %504 = memref.load %arg1[%c6_231, %c14_232] : memref<8x16xf32, #tpu.memory_space<smem>>
    %505 = vector.broadcast %504 : f32 to vector<2x32xf32>
    %506 = arith.mulf %505, %16 : vector<2x32xf32>
    %507 = arith.addf %503, %506 : vector<2x32xf32>
    %c7_233 = arith.constant 7 : index
    %c14_234 = arith.constant 14 : index
    %508 = memref.load %arg1[%c7_233, %c14_234] : memref<8x16xf32, #tpu.memory_space<smem>>
    %509 = vector.broadcast %508 : f32 to vector<2x32xf32>
    %510 = arith.mulf %509, %18 : vector<2x32xf32>
    %511 = arith.addf %507, %510 : vector<2x32xf32>
    %512 = arith.index_cast %2 : i32 to index
    %c448 = arith.constant 448 : index
    %513 = vector.load %arg3[%512, %c448] : memref<2x512xf32, #tpu.memory_space<vmem>>, vector<2x32xf32>
    tpu.vector_store %arg3[%512, %c448], %511 {strides = array<i32>} : memref<2x512xf32, #tpu.memory_space<vmem>>, vector<2x32xf32>,
    %c0_235 = arith.constant 0 : index
    %c15 = arith.constant 15 : index
    %514 = memref.load %arg1[%c0_235, %c15] : memref<8x16xf32, #tpu.memory_space<smem>>
    %515 = vector.broadcast %514 : f32 to vector<2x32xf32>
    %516 = arith.mulf %515, %4 : vector<2x32xf32>
    %c1_236 = arith.constant 1 : index
    %c15_237 = arith.constant 15 : index
    %517 = memref.load %arg1[%c1_236, %c15_237] : memref<8x16xf32, #tpu.memory_space<smem>>
    %518 = vector.broadcast %517 : f32 to vector<2x32xf32>
    %519 = arith.mulf %518, %6 : vector<2x32xf32>
    %520 = arith.addf %516, %519 : vector<2x32xf32>
    %c2_238 = arith.constant 2 : index
    %c15_239 = arith.constant 15 : index
    %521 = memref.load %arg1[%c2_238, %c15_239] : memref<8x16xf32, #tpu.memory_space<smem>>
    %522 = vector.broadcast %521 : f32 to vector<2x32xf32>
    %523 = arith.mulf %522, %8 : vector<2x32xf32>
    %524 = arith.addf %520, %523 : vector<2x32xf32>
    %c3_240 = arith.constant 3 : index
    %c15_241 = arith.constant 15 : index
    %525 = memref.load %arg1[%c3_240, %c15_241] : memref<8x16xf32, #tpu.memory_space<smem>>
    %526 = vector.broadcast %525 : f32 to vector<2x32xf32>
    %527 = arith.mulf %526, %10 : vector<2x32xf32>
    %528 = arith.addf %524, %527 : vector<2x32xf32>
    %c4_242 = arith.constant 4 : index
    %c15_243 = arith.constant 15 : index
    %529 = memref.load %arg1[%c4_242, %c15_243] : memref<8x16xf32, #tpu.memory_space<smem>>
    %530 = vector.broadcast %529 : f32 to vector<2x32xf32>
    %531 = arith.mulf %530, %12 : vector<2x32xf32>
    %532 = arith.addf %528, %531 : vector<2x32xf32>
    %c5_244 = arith.constant 5 : index
    %c15_245 = arith.constant 15 : index
    %533 = memref.load %arg1[%c5_244, %c15_245] : memref<8x16xf32, #tpu.memory_space<smem>>
    %534 = vector.broadcast %533 : f32 to vector<2x32xf32>
    %535 = arith.mulf %534, %14 : vector<2x32xf32>
    %536 = arith.addf %532, %535 : vector<2x32xf32>
    %c6_246 = arith.constant 6 : index
    %c15_247 = arith.constant 15 : index
    %537 = memref.load %arg1[%c6_246, %c15_247] : memref<8x16xf32, #tpu.memory_space<smem>>
    %538 = vector.broadcast %537 : f32 to vector<2x32xf32>
    %539 = arith.mulf %538, %16 : vector<2x32xf32>
    %540 = arith.addf %536, %539 : vector<2x32xf32>
    %c7_248 = arith.constant 7 : index
    %c15_249 = arith.constant 15 : index
    %541 = memref.load %arg1[%c7_248, %c15_249] : memref<8x16xf32, #tpu.memory_space<smem>>
    %542 = vector.broadcast %541 : f32 to vector<2x32xf32>
    %543 = arith.mulf %542, %18 : vector<2x32xf32>
    %544 = arith.addf %540, %543 : vector<2x32xf32>
    %545 = arith.index_cast %2 : i32 to index
    %c480 = arith.constant 480 : index
    %546 = vector.load %arg3[%545, %c480] : memref<2x512xf32, #tpu.memory_space<vmem>>, vector<2x32xf32>
    tpu.vector_store %arg3[%545, %c480], %544 {strides = array<i32>} : memref<2x512xf32, #tpu.memory_space<vmem>>, vector<2x32xf32>,
    %c1_i32_250 = arith.constant 1 : i32
    return
  }
  func.func @transform_0(%arg0: i32) -> (i32, i32) {
    %c0_i32 = arith.constant 0 : i32
    %c0_i32_0 = arith.constant 0 : i32
    %c0_i32_1 = arith.constant 0 : i32
    return %c0_i32, %c0_i32_0 : i32, i32
  }
  func.func @transform_1(%arg0: i32) -> (i32, i32) {
    %c0_i32 = arith.constant 0 : i32
    %c0_i32_0 = arith.constant 0 : i32
    return %arg0, %c0_i32 : i32, i32
  }
  func.func @transform_2(%arg0: i32) -> (i32, i32) {
    %c0_i32 = arith.constant 0 : i32
    %c0_i32_0 = arith.constant 0 : i32
    return %arg0, %c0_i32 : i32, i32
  }
}

</mosaic_0001>

<bundles_post_ra>
// kernel: tpu_custom_call.1
= control target key start
LH: loop header
LB: loop body
LE: loop exit
PB: predicated region body
PF: predicated region fallthrough
CT: control target
= control target key end

     0   :  { %7 = vsyncpa [#allocation5], 0  ;;  %s1609_s0 = inlined_call_operand.hbm [shape: f32[8,16], index: 0, kind: input, shape index: {}]   ;;  %s1610_s1 = inlined_call_operand.hbm [shape: f32[2,256], index: 1, kind: input, shape index: {}]   ;;  %s1611_s2 = inlined_call_operand.hbm [shape: f32[2,512], index: 2, kind: output, shape index: {}]  }
   0x1   :  { %8 = vsyncpa [#allocation3], 0 }
   0x2   :  { %9 = vsyncpa [#allocation4], 0  ;;  %s1190_s9 = smov [#allocation2]   ;;  %s1191_s12 = smov [#allocation6]  }
   0x3   :  { %17 = dma.hbm_to_smem %s1609_s0, 128, %s1190_s9, [#allocation5]  }
   0x4   :  { %s24_s13 = sshll.u32 %s1191_s12, 4  ;;  %s25_s13 = int_to_ptr.vmem [resolvable:$true] %s24_s13 }
   0x5   :  { %s1152_s14 = scalar_lea.vmem %s25_s13, 64  ;;  %p1157_p1 = scmp.lt.s32.totalorder %s25_s13, %s25_s13 }
   0x6   :  { %p1153_p0 = scmp.ne.s32.totalorder %s25_s13, %s1152_s14  ;;  %p1158_p2 = scmp.lt.s32.totalorder %s1152_s14, %s1152_s14 }
   0x8   :  { %p1159_p3 = por %p1158_p2, %p1157_p1 }
   0xa   :  { %p1160_p4 = pnand %p1159_p3, %p1153_p0 }
   0xc   :  { %1163 = shalt.err (!%p1160_p4)
}
   0xd   :  { %27 = dma.hbm_to_vmem [thread:$0]  %s1610_s1, 64, %s25_s13, [#allocation3]  }
   0xe   :  { %1184 = dma.done.wait [#allocation5], 128  }
   0xf   :  { %1185 = vsyncadd [#allocation5], 4294967168 }
  0x10   :  { %1186 = dma.done.wait [#allocation3], 64  }
  0x11   :  { %1187 = vsyncadd [#allocation3], 4294967232 }
  0x12   :  { %34 = sfence }
  0x13   :  { %s1003_s0 = sld [smem:[#allocation2 + $0x180]]  ;;  %v1217_v0 = vld [vmem:[#allocation6] sm:$0x3]  ;;  %v1219_v2 = vld [vmem:[#allocation6 + $0x2] sm:$0x3]  ;;  %s1192_s23 = smov 32  }
  0x14   :  { %s1001_s17 = sld [smem:[#allocation2 + $0x80]]  ;;  %s1193_s24 = smov 96   ;;  %vm92_vm0 = vcmask 254976   ;;  %vm153_vm1 = vcmask 517376   ;;  %vm214_vm2 = vcmask 779776   ;;  %vm275_vm3 = vcmask 1042176  }
  0x15   :  { %s1005_s18 = sld [smem:[#allocation2 + $0x280]]  ;;  %s1194_s27 = smov 64  }
  0x16   :  { %s1002_s19 = sld [smem:[#allocation2 + $0x100]] }
  0x17   :  { %s1007_s20 = sld [smem:[#allocation2 + $0x380]] }
  0x18   :  { %s1006_s21 = sld [smem:[#allocation2 + $0x300]] }
  0x19   :  { %v57_v1 = vstv %s1003_s0  ;;  %s1010_s22 = sld [smem:[#allocation2 + $0x101]] }
  0x1a   :  { %v58_v3 = vmul.f32 %v57_v1, %v1217_v0  ;;  %v41_v4 = vstv %s1001_s17  ;;  %s1009_s1 = sld [smem:[#allocation2 + $0x81]] }
  0x1b   :  { %v42_v5 = vmul.f32 %v41_v4, %v1217_v0  ;;  %v69_v6 = vstv %s1005_s18  ;;  %s1013_s25 = sld [smem:[#allocation2 + $0x281]] }
  0x1c   :  { %60 = vrot.lane.b32.xlu1 %v58_v3, %s1192_s23  ;;  %v70_v7 = vmul.f32 %v69_v6, %v1219_v2  ;;  %v49_v8 = vstv %s1002_s19  ;;  %s1011_s26 = sld [smem:[#allocation2 + $0x181]] }
  0x1d   :  { %44 = vrot.lane.b32.xlu0 %v42_v5, %s1193_s24  ;;  %v50_v9 = vmul.f32 %v49_v8, %v1217_v0  ;;  %v85_v10 = vstv %s1007_s20  ;;  %s1015_s28 = sld [smem:[#allocation2 + $0x381]] }
  0x1e   :  { %v77_v11 = vstv %s1006_s21  ;;  %v86_v12 = vmul.f32 %v85_v10, %v1219_v2  ;;  %s1014_s29 = sld [smem:[#allocation2 + $0x301]] }
  0x1f   :  { %v78_v13 = vmul.f32 %v77_v11, %v1219_v2  ;;  %v106_v14 = vstv %s1010_s22  ;;  %s1017_s30 = sld [smem:[#allocation2 + $0x82]] }
  0x20   :  { %72 = vrot.lane.b32.xlu1 %v70_v7, %s1193_s24  ;;  %v98_v15 = vstv %s1009_s1  ;;  %v107_v16 = vmul.f32 %v106_v14, %v1217_v0  ;;  %s1018_s3 = sld [smem:[#allocation2 + $0x102]] }
  0x21   :  { %52 = vrot.lane.b32.xlu0 %v50_v9, %s1194_s27  ;;  %v99_v17 = vmul.f32 %v98_v15, %v1217_v0  ;;  %v126_v18 = vstv %s1013_s25  ;;  %s1019_s4 = sld [smem:[#allocation2 + $0x182]] }
  0x22   :  { %v114_v19 = vstv %s1011_s26  ;;  %v127_v20 = vmul.f32 %v126_v18, %v1219_v2  ;;  %s1021_s5 = sld [smem:[#allocation2 + $0x282]] }
  0x23   :  { %v115_v21 = vmul.f32 %v114_v19, %v1217_v0  ;;  %v142_v22 = vstv %s1015_s28  ;;  %s1022_s6 = sld [smem:[#allocation2 + $0x302]] }
  0x24   :  { %88 = vrot.lane.b32.xlu1 %v86_v12, %s1192_s23  ;;  %v134_v23 = vstv %s1014_s29  ;;  %v143_v24 = vmul.f32 %v142_v22, %v1219_v2  ;;  %s1023_s7 = sld [smem:[#allocation2 + $0x382]] }
  0x25   :  { %80 = vrot.lane.b32.xlu0 %v78_v13, %s1194_s27  ;;  %v135_v25 = vmul.f32 %v134_v23, %v1219_v2  ;;  %v159_v26 = vstv %s1017_s30  ;;  %s1026_s8 = sld [smem:[#allocation2 + $0x103]] }
  0x26   :  { %v167_v27 = vstv %s1018_s3  ;;  %v160_v28 = vmul.f32 %v159_v26, %v1217_v0  ;;  %s1025_s9 = sld [smem:[#allocation2 + $0x83]] }
  0x27   :  { %v168_v29 = vmul.f32 %v167_v27, %v1217_v0  ;;  %v175_v30 = vstv %s1019_s4  ;;  %s1029_s10 = sld [smem:[#allocation2 + $0x283]] }
  0x28   :  { %109 = vrot.lane.b32.xlu1 %v107_v16, %s1194_s27  ;;  %v187_v31 = vstv %s1021_s5  ;;  %v176_v32 = vmul.f32 %v175_v30, %v1217_v0  ;;  %s1027_s11 = sld [smem:[#allocation2 + $0x183]] }
  0x29   :  { %101 = vrot.lane.b32.xlu0 %v99_v17, %s1193_s24  ;;  %v188_v33 = vmul.f32 %v187_v31, %v1219_v2  ;;  %v195_v34 = vstv %s1022_s6  ;;  %s1031_s12 = sld [smem:[#allocation2 + $0x383]] }
  0x2a   :  { %v203_v35 = vstv %s1023_s7  ;;  %v196_v36 = vmul.f32 %v195_v34, %v1219_v2  ;;  %s1030_s13 = sld [smem:[#allocation2 + $0x303]] }
  0x2b   :  { %v204_v37 = vmul.f32 %v203_v35, %v1219_v2  ;;  %v228_v38 = vstv %s1026_s8  ;;  %s1033_s14 = sld [smem:[#allocation2 + $0x84]] }
  0x2c   :  { %129 = vrot.lane.b32.xlu1 %v127_v20, %s1193_s24  ;;  %v220_v39 = vstv %s1025_s9  ;;  %v229_v40 = vmul.f32 %v228_v38, %v1217_v0  ;;  %s1034_s15 = sld [smem:[#allocation2 + $0x104]] }
  0x2d   :  { %117 = vrot.lane.b32.xlu0 %v115_v21, %s1192_s23  ;;  %v221_v41 = vmul.f32 %v220_v39, %v1217_v0  ;;  %v248_v42 = vstv %s1029_s10  ;;  %s1035_s16 = sld [smem:[#allocation2 + $0x184]] }
  0x2e   :  { %v236_v43 = vstv %s1027_s11  ;;  %v249_v44 = vmul.f32 %v248_v42, %v1219_v2  ;;  %s1037_s0 = sld [smem:[#allocation2 + $0x284]] }
  0x2f   :  { %v237_v45 = vmul.f32 %v236_v43, %v1217_v0  ;;  %v264_v46 = vstv %s1031_s12  ;;  %s1038_s17 = sld [smem:[#allocation2 + $0x304]] }
  0x30   :  { %145 = vrot.lane.b32.xlu1 %v143_v24, %s1192_s23  ;;  %v256_v47 = vstv %s1030_s13  ;;  %v265_v48 = vmul.f32 %v264_v46, %v1219_v2  ;;  %s1039_s18 = sld [smem:[#allocation2 + $0x384]] }
  0x31   :  { %137 = vrot.lane.b32.xlu0 %v135_v25, %s1194_s27  ;;  %v257_v49 = vmul.f32 %v256_v47, %v1219_v2  ;;  %v281_v50 = vstv %s1033_s14  ;;  %s1041_s19 = sld [smem:[#allocation2 + $0x85]] }
  0x32   :  { %v289_v51 = vstv %s1034_s15  ;;  %v282_v52 = vmul.f32 %v281_v50, %v1217_v0  ;;  %s1042_s20 = sld [smem:[#allocation2 + $0x105]] }
  0x33   :  { %v290_v53 = vmul.f32 %v289_v51, %v1217_v0  ;;  %v297_v54 = vstv %s1035_s16  ;;  %s1043_s21 = sld [smem:[#allocation2 + $0x185]] }
  0x34   :  { %162 = vrot.lane.b32.xlu1 %v160_v28, %s1193_s24  ;;  %v309_v55 = vstv %s1037_s0  ;;  %v298_v56 = vmul.f32 %v297_v54, %v1217_v0  ;;  %s1045_s22 = sld [smem:[#allocation2 + $0x285]] }
  0x35   :  { %170 = vrot.lane.b32.xlu0 %v168_v29, %s1194_s27  ;;  %v310_v57 = vmul.f32 %v309_v55, %v1219_v2  ;;  %v317_v58 = vstv %s1038_s17  ;;  %s1046_s1 = sld [smem:[#allocation2 + $0x305]] }
  0x36   :  { %v325_v59 = vstv %s1039_s18  ;;  %v318_v60 = vmul.f32 %v317_v58, %v1219_v2  ;;  %s1047_s25 = sld [smem:[#allocation2 + $0x385]] }
  0x37   :  { %v326_v61 = vmul.f32 %v325_v59, %v1219_v2  ;;  %v337_v62 = vstv %s1041_s19  ;;  %s1050_s26 = sld [smem:[#allocation2 + $0x106]] }
  0x38   :  { %178 = vrot.lane.b32.xlu1 %v176_v32, %s1192_s23  ;;  %v345_v63 = vstv %s1042_s20  ;;  %v338_v1 = vmul.f32 %v337_v62, %v1217_v0  ;;  %s1049_s28 = sld [smem:[#allocation2 + $0x86]] }
  0x39   :  { %190 = vrot.lane.b32.xlu0 %v188_v33, %s1193_s24  ;;  %v346_v3 = vmul.f32 %v345_v63, %v1217_v0  ;;  %v353_v4 = vstv %s1043_s21  ;;  %s1105_s29 = sld [smem:[#allocation2 + $0x8d]] }
  0x3a   :  { %v365_v5 = vstv %s1045_s22  ;;  %v354_v6 = vmul.f32 %v353_v4, %v1217_v0  ;;  %s1073_s30 = sld [smem:[#allocation2 + $0x89]] }
  0x3b   :  { %v366_v7 = vmul.f32 %v365_v5, %v1219_v2  ;;  %v373_v8 = vstv %s1046_s1  ;;  %s1113_s3 = sld [smem:[#allocation2 + $0x8e]] }
  0x3c   :  { %198 = vrot.lane.b32.xlu1 %v196_v36, %s1194_s27  ;;  %v381_v9 = vstv %s1047_s25  ;;  %v374_v10 = vmul.f32 %v373_v8, %v1219_v2  ;;  %s1081_s4 = sld [smem:[#allocation2 + $0x8a]] }
  0x3d   :  { %206 = vrot.lane.b32.xlu0 %v204_v37, %s1192_s23  ;;  %v382_v11 = vmul.f32 %v381_v9, %v1219_v2  ;;  %v405_v12 = vstv %s1050_s26  ;;  %s1074_s5 = sld [smem:[#allocation2 + $0x109]] }
  0x3e   :  { %v397_v13 = vstv %s1049_s28  ;;  %v406_v14 = vmul.f32 %v405_v12, %v1217_v0  ;;  %s1057_s6 = sld [smem:[#allocation2 + $0x87]] }
  0x3f   :  { %v398_v15 = vmul.f32 %v397_v13, %v1217_v0  ;;  %v809_v16 = vstv %s1105_s29  ;;  %s1106_s7 = sld [smem:[#allocation2 + $0x10d]] }
  0x40   :  { %231 = vrot.lane.b32.xlu1 %v229_v40, %s1194_s27  ;;  %v573_v17 = vstv %s1073_s30  ;;  %v810_v18 = vmul.f32 %v809_v16, %v1217_v0  ;;  %s1089_s8 = sld [smem:[#allocation2 + $0x8b]] }
  0x41   :  { %223 = vrot.lane.b32.xlu0 %v221_v41, %s1193_s24  ;;  %v574_v19 = vmul.f32 %v573_v17, %v1217_v0  ;;  %v869_v20 = vstv %s1113_s3  ;;  %s1082_s9 = sld [smem:[#allocation2 + $0x10a]] }
  0x42   :  { %v633_v21 = vstv %s1081_s4  ;;  %v870_v22 = vmul.f32 %v869_v20, %v1217_v0  ;;  %s1121_s10 = sld [smem:[#allocation2 + $0x8f]] }
  0x43   :  { %v634_v23 = vmul.f32 %v633_v21, %v1217_v0  ;;  %v581_v24 = vstv %s1074_s5  ;;  %s1058_s11 = sld [smem:[#allocation2 + $0x107]] }
  0x44   :  { %251 = vrot.lane.b32.xlu1 %v249_v44, %s1193_s24  ;;  %v457_v25 = vstv %s1057_s6  ;;  %v582_v26 = vmul.f32 %v581_v24, %v1217_v0  ;;  %s1114_s12 = sld [smem:[#allocation2 + $0x10e]] }
  0x45   :  { %239 = vrot.lane.b32.xlu0 %v237_v45, %s1192_s23  ;;  %v458_v27 = vmul.f32 %v457_v25, %v1217_v0  ;;  %v817_v28 = vstv %s1106_s7  ;;  %s1090_s13 = sld [smem:[#allocation2 + $0x10b]] }
  0x46   :  { %v693_v29 = vstv %s1089_s8  ;;  %v818_v30 = vmul.f32 %v817_v28, %v1217_v0  ;;  %s1075_s14 = sld [smem:[#allocation2 + $0x189]] }
  0x47   :  { %v694_v31 = vmul.f32 %v693_v29, %v1217_v0  ;;  %v641_v32 = vstv %s1082_s9  ;;  %s1122_s15 = sld [smem:[#allocation2 + $0x10f]] }
  0x48   :  { %267 = vrot.lane.b32.xlu1 %v265_v48, %s1192_s23  ;;  %v929_v33 = vstv %s1121_s10  ;;  %v642_v34 = vmul.f32 %v641_v32, %v1217_v0  ;;  %s1107_s16 = sld [smem:[#allocation2 + $0x18d]] }
  0x49   :  { %259 = vrot.lane.b32.xlu0 %v257_v49, %s1194_s27  ;;  %v930_v35 = vmul.f32 %v929_v33, %v1217_v0  ;;  %v465_v36 = vstv %s1058_s11  ;;  %s1083_s0 = sld [smem:[#allocation2 + $0x18a]] }
  0x4a   :  { %v877_v37 = vstv %s1114_s12  ;;  %v466_v38 = vmul.f32 %v465_v36, %v1217_v0  ;;  %s1051_s17 = sld [smem:[#allocation2 + $0x186]] }
  0x4b   :  { %v878_v39 = vmul.f32 %v877_v37, %v1217_v0  ;;  %v701_v40 = vstv %s1090_s13  ;;  %s1059_s18 = sld [smem:[#allocation2 + $0x187]] }
  0x4c   :  { %284 = vrot.lane.b32.xlu1 %v282_v52, %s1193_s24  ;;  %v589_v41 = vstv %s1075_s14  ;;  %v702_v42 = vmul.f32 %v701_v40, %v1217_v0  ;;  %s1115_s19 = sld [smem:[#allocation2 + $0x18e]] }
  0x4d   :  { %292 = vrot.lane.b32.xlu0 %v290_v53, %s1194_s27  ;;  %v590_v43 = vmul.f32 %v589_v41, %v1217_v0  ;;  %v937_v44 = vstv %s1122_s15  ;;  %s37_s20 = sld [smem:[#allocation2]] }
  0x4e   :  { %v825_v45 = vstv %s1107_s16  ;;  %v938_v46 = vmul.f32 %v937_v44, %v1217_v0  ;;  %s1123_s21 = sld [smem:[#allocation2 + $0x18f]] }
  0x4f   :  { %v826_v47 = vmul.f32 %v825_v45, %v1217_v0  ;;  %v649_v48 = vstv %s1083_s0  ;;  %s1091_s22 = sld [smem:[#allocation2 + $0x18b]] }
  0x50   :  { %300 = vrot.lane.b32.xlu1 %v298_v56, %s1192_s23  ;;  %v413_v49 = vstv %s1051_s17  ;;  %v650_v50 = vmul.f32 %v649_v48, %v1217_v0  ;;  %s1109_s1 = sld [smem:[#allocation2 + $0x28d]] }
  0x51   :  { %312 = vrot.lane.b32.xlu0 %v310_v57, %s1193_s24  ;;  %v414_v51 = vmul.f32 %v413_v49, %v1217_v0  ;;  %v473_v52 = vstv %s1059_s18  ;;  %s1077_s25 = sld [smem:[#allocation2 + $0x289]] }
  0x52   :  { %v885_v53 = vstv %s1115_s19  ;;  %s1331_s26 = sld [smem:[#allocation2 + $0x200]]  ;;  %v474_v54 = vmul.f32 %v473_v52, %v1217_v0 }
  0x53   :  { %v38_v55 = vstv %s37_s20  ;;  %v886_v56 = vmul.f32 %v885_v53, %v1217_v0  ;;  %s1085_s28 = sld [smem:[#allocation2 + $0x28a]] }
  0x54   :  { %320 = vrot.lane.b32.xlu1 %v318_v60, %s1194_s27  ;;  %v945_v57 = vstv %s1123_s21  ;;  %s1337_s29 = sld [smem:[#allocation2 + $0x286]]  ;;  %v39_v59 = vmul.f32 %v38_v55, %v1217_v0 }
  0x55   :  { %328 = vrot.lane.b32.xlu0 %v326_v61, %s1192_s23  ;;  %v709_v58 = vstv %s1091_s22  ;;  %s1340_s30 = sld [smem:[#allocation2 + $0x1]]  ;;  %v946_v60 = vmul.f32 %v945_v57, %v1217_v0 }
  0x56   :  { %v710_v61 = vmul.f32 %v709_v58, %v1217_v0  ;;  %v837_v62 = vstv %s1109_s1  ;;  %s1346_s3 = sld [smem:[#allocation2 + $0x287]] }
  0x57   :  { %s1348_s4 = sld [smem:[#allocation2 + $0x28e]]  ;;  %v838_v5 = vmul.f32 %v837_v62, %v1219_v2 }
  0x58   :  { %340 = vrot.lane.b32.xlu1 %v338_v1, %s1193_s24  ;;  %v601_v1 = vstv %s1077_s25  ;;  %s1356_s5 = sld [smem:[#allocation2 + $0x201]] }
  0x59   :  { %348 = vrot.lane.b32.xlu0 %v346_v3, %s1194_s27  ;;  %v661_v8 = vstv %s1085_s28  ;;  %s1016_s6 = sld [smem:[#allocation2 + $0x2]] }
  0x5a   :  { %s1020_s7 = sld [smem:[#allocation2 + $0x202]] }
  0x5b   :  { %s1024_s8 = sld [smem:[#allocation2 + $0x3]] }
  0x5c   :  { %356 = vrot.lane.b32.xlu1 %v354_v6, %s1192_s23  ;;  %v65_v6 = vstv %s1331_s26  ;;  %v485_v17 = vstv %s1346_s3  ;;  %s1028_s9 = sld [smem:[#allocation2 + $0x203]] }
  0x5d   :  { %368 = vrot.lane.b32.xlu0 %v366_v7, %s1193_s24  ;;  %v602_v7 = vmul.f32 %v601_v1, %v1219_v2  ;;  %v66_v13 = vmul.f32 %v65_v6, %v1219_v2  ;;  %v897_v20 = vstv %s1348_s4  ;;  %v486_v24 = vmul.f32 %v485_v17, %v1219_v2  ;;  %s1032_s10 = sld [smem:[#allocation2 + $0x4]] }
  0x5e   :  { %v898_v25 = vmul.f32 %v897_v20, %v1219_v2  ;;  %v122_v29 = vstv %s1356_s5  ;;  %s1036_s11 = sld [smem:[#allocation2 + $0x204]] }
  0x5f   :  { %s1078_s12 = sld [smem:[#allocation2 + $0x309]] }
  0x60   :  { %376 = vrot.lane.b32.xlu1 %v374_v10, %s1194_s27  ;;  %v425_v10 = vstv %s1337_s29  ;;  %s1110_s13 = sld [smem:[#allocation2 + $0x30d]] }
  0x61   :  { %384 = vrot.lane.b32.xlu0 %v382_v11, %s1192_s23  ;;  %v426_v16 = vmul.f32 %v425_v10, %v1219_v2  ;;  %s1040_s14 = sld [smem:[#allocation2 + $0x5]] }
  0x62   :  { %s1054_s15 = sld [smem:[#allocation2 + $0x306]] }
  0x63   :  { %v278_v10 = vstv %s1032_s10  ;;  %s1044_s16 = sld [smem:[#allocation2 + $0x205]] }
  0x64   :  { %408 = vrot.lane.b32.xlu1 %v406_v14, %s1194_s27  ;;  %v662_v14 = vmul.f32 %v661_v8, %v1219_v2  ;;  %s1118_s0 = sld [smem:[#allocation2 + $0x30e]] }
  0x65   :  { %400 = vrot.lane.b32.xlu0 %v398_v15, %s1193_s24  ;;  %v95_v15 = vstv %s1340_s30  ;;  %s1079_s17 = sld [smem:[#allocation2 + $0x389]] }
  0x66   :  { %s1389_s18 = sld [smem:[#allocation2 + $0x6]] }
  0x67   :  { %s1111_s19 = sld [smem:[#allocation2 + $0x38d]] }
  0x68   :  { %812 = vrot.lane.b32.xlu1 %v810_v18, %s1193_s24  ;;  %s1397_s20 = sld [smem:[#allocation2 + $0x28b]] }
  0x69   :  { %576 = vrot.lane.b32.xlu0 %v574_v19, %s1193_s24  ;;  %s1399_s21 = sld [smem:[#allocation2 + $0x386]] }
  0x6a   :  { %s1401_s22 = sld [smem:[#allocation2 + $0x9]] }
  0x6b   :  { %s1406_s1 = sld [smem:[#allocation2 + $0x28f]] }
  0x6c   :  { %872 = vrot.lane.b32.xlu1 %v870_v22, %s1193_s24  ;;  %s1408_s25 = sld [smem:[#allocation2 + $0x38e]] }
  0x6d   :  { %636 = vrot.lane.b32.xlu0 %v634_v23, %s1193_s24  ;;  %v96_v23 = vmul.f32 %v95_v15, %v1217_v0  ;;  %s1411_s26 = sld [smem:[#allocation2 + $0xd]] }
  0x6e   :  { %s1416_s28 = sld [smem:[#allocation2 + $0x30a]] }
  0x6f   :  { %s1419_s29 = sld [smem:[#allocation2 + $0x38b]] }
  0x70   :  { %584 = vrot.lane.b32.xlu1 %v582_v26, %s1194_s27  ;;  %s1422_s30 = sld [smem:[#allocation2 + $0xa]] }
  0x71   :  { %460 = vrot.lane.b32.xlu0 %v458_v27, %s1193_s24  ;;  %s1431_s3 = sld [smem:[#allocation2 + $0x307]] }
  0x72   :  { %s1435_s4 = sld [smem:[#allocation2 + $0x88]] }
  0x73   :  { %s1437_s5 = sld [smem:[#allocation2 + $0x7]] }
  0x74   :  { %820 = vrot.lane.b32.xlu1 %v818_v30, %s1194_s27  ;;  %s1461_s10 = sld [smem:[#allocation2 + $0x30f]] }
  0x75   :  { %696 = vrot.lane.b32.xlu0 %v694_v31, %s1193_s24 }
  0x78   :  { %644 = vrot.lane.b32.xlu1 %v642_v34, %s1194_s27 }
  0x79   :  { %932 = vrot.lane.b32.xlu0 %v930_v35, %s1193_s24  ;;  %v123_v35 = vmul.f32 %v122_v29, %v1219_v2  ;;  %v845_v29 = vstv %s1110_s13  ;;  %s1475_s13 = sld [smem:[#allocation2 + $0x38a]] }
  0x7c   :  { %468 = vrot.lane.b32.xlu1 %v466_v38, %s1194_s27  ;;  %v156_v38 = vstv %s1016_s6  ;;  %s1442_s6 = sld [smem:[#allocation2 + $0xe]] }
  0x7d   :  { %880 = vrot.lane.b32.xlu0 %v878_v39, %s1194_s27 }
  0x80   :  { %704 = vrot.lane.b32.xlu1 %v702_v42, %s1194_s27  ;;  %v157_v42 = vmul.f32 %v156_v38, %v1217_v0 }
  0x81   :  { %592 = vrot.lane.b32.xlu0 %v590_v43, %s1192_s23 }
  0x84   :  { %940 = vrot.lane.b32.xlu1 %v938_v46, %s1194_s27  ;;  %v183_v46 = vstv %s1020_s7  ;;  %s1447_s7 = sld [smem:[#allocation2 + $0x30b]] }
  0x85   :  { %828 = vrot.lane.b32.xlu0 %v826_v47, %s1192_s23 }
  0x88   :  { %652 = vrot.lane.b32.xlu1 %v650_v50, %s1192_s23 }
  0x89   :  { %416 = vrot.lane.b32.xlu0 %v414_v51, %s1192_s23  ;;  %v184_v51 = vmul.f32 %v183_v46, %v1219_v2 }
  0x8c   :  { %476 = vrot.lane.b32.xlu1 %v474_v54, %s1192_s23 }
  0x8d   :  { %888 = vrot.lane.b32.xlu0 %v886_v56, %s1192_s23  ;;  %v217_v56 = vstv %s1024_s8  ;;  %s1451_s8 = sld [smem:[#allocation2 + $0x108]] }
  0x8e   :  { %v61_v63 = vpop.permute.xlu1 %60 }
  0x8f   :  { %v45_v3 = vpop.permute.xlu0 %44 }
  0x90   :  { %v47_v4 = vadd.f32 %v45_v3, %v39_v59  ;;  %948 = vrot.lane.b32.xlu1 %v946_v60, %s1192_s23  ;;  %v218_v60 = vmul.f32 %v217_v56, %v1217_v0  ;;  %v244_v3 = vstv %s1028_s9  ;;  %s1454_s9 = sld [smem:[#allocation2 + $0xb]] }
  0x91   :  { %712 = vrot.lane.b32.xlu0 %v710_v61, %s1192_s23 }
  0x92   :  { %v73_v9 = vpop.permute.xlu1 %72 }
  0x93   :  { %v53_v11 = vpop.permute.xlu0 %52 }
  0x94   :  { %v55_v12 = vadd.f32 %v53_v11, %v47_v4  ;;  %840 = vrot.lane.b32.xlu1 %v838_v5, %s1193_s24 }
  0x95   :  { %604 = vrot.lane.b32.xlu0 %v602_v7, %s1193_s24  ;;  %v245_v7 = vmul.f32 %v244_v3, %v1219_v2 }
  0x96   :  { %v63_v18 = vadd.f32 %v61_v63, %v55_v12  ;;  %v89_v19 = vpop.permute.xlu1 %88 }
  0x97   :  { %v81_v21 = vpop.permute.xlu0 %80 }
  0x98   :  { %v67_v22 = vadd.f32 %v66_v13, %v63_v18  ;;  %664 = vrot.lane.b32.xlu1 %v662_v14, %s1193_s24  ;;  %v279_v14 = vmul.f32 %v278_v10, %v1217_v0  ;;  %v305_v18 = vstv %s1036_s11  ;;  %v957_v10 = vstv %s1406_s1  ;;  %s1465_s11 = sld [smem:[#allocation2 + $0x188]] }
  0x99   :  { %428 = vrot.lane.b32.xlu0 %v426_v16, %s1193_s24  ;;  %s1101_s1 = sld [smem:[#allocation2 + $0x28c]] }
  0x9a   :  { %v75_v26 = vadd.f32 %v73_v9, %v67_v22  ;;  %v110_v27 = vpop.permute.xlu1 %109 }
  0x9b   :  { %v102_v28 = vpop.permute.xlu0 %101 }
  0x9c   :  { %v83_v30 = vadd.f32 %v81_v21, %v75_v26  ;;  %v104_v31 = vadd.f32 %v102_v28, %v96_v23  ;;  %488 = vrot.lane.b32.xlu1 %v486_v24, %s1193_s24  ;;  %v609_v21 = vstv %s1078_s12  ;;  %v306_v24 = vmul.f32 %v305_v18, %v1219_v2  ;;  %s1468_s12 = sld [smem:[#allocation2 + $0xf]] }
  0x9d   :  { %900 = vrot.lane.b32.xlu0 %v898_v25, %s1193_s24  ;;  %v610_v26 = vmul.f32 %v609_v21, %v1219_v2 }
  0x9e   :  { %v91_v32 = vadd.f32 %v89_v19, %v83_v30  ;;  %v130_v33 = vpop.permute.xlu1 %129  ;;  %v112_v34 = vadd.f32 %v110_v27, %v104_v31  ;;  %v334_v30 = vstv %s1040_s14  ;;  %s1480_s14 = sld [smem:[#allocation2 + $0x288]] }
  0x9f   :  { %v118_v36 = vpop.permute.xlu0 %117 }
  0xa0   :  { %v120_v37 = vadd.f32 %v118_v36, %v112_v34  ;;  %93 = vst.msk [vmem:[#allocation7] sm:$0x3] %vm92_vm0, %v91_v32  ;;  %v335_v36 = vmul.f32 %v334_v30, %v1217_v0 }
  0xa2   :  { %v124_v39 = vadd.f32 %v123_v35, %v120_v37  ;;  %v146_v40 = vpop.permute.xlu1 %145  ;;  %v433_v37 = vstv %s1054_s15  ;;  %s1487_s15 = sld [smem:[#allocation2 + $0x387]] }
  0xa3   :  { %v138_v41 = vpop.permute.xlu0 %137 }
  0xa4   :  { %v132_v43 = vadd.f32 %v130_v33, %v124_v39  ;;  %v846_v33 = vmul.f32 %v845_v29, %v1219_v2 }
  0xa6   :  { %v140_v44 = vadd.f32 %v138_v41, %v132_v43  ;;  %v163_v45 = vpop.permute.xlu1 %162  ;;  %v361_v41 = vstv %s1044_s16  ;;  %s1493_s16 = sld [smem:[#allocation2 + $0x308]] }
  0xa7   :  { %v165_v47 = vadd.f32 %v163_v45, %v157_v42  ;;  %v171_v48 = vpop.permute.xlu0 %170  ;;  %v905_v45 = vstv %s1118_s0  ;;  %s1499_s0 = sld [smem:[#allocation2 + $0x38f]] }
  0xa8   :  { %v148_v49 = vadd.f32 %v146_v40, %v140_v44  ;;  %v434_v40 = vmul.f32 %v433_v37, %v1219_v2  ;;  %v866_v37 = vstv %s1442_s6  ;;  %s1068_s6 = sld [smem:[#allocation2 + $0x208]] }
  0xa9   :  { %v173_v50 = vadd.f32 %v171_v48, %v165_v47  ;;  %v362_v47 = vmul.f32 %v361_v41, %v1219_v2 }
  0xaa   :  { %150 = vrot.lane.b32.xlu0 %v148_v49, %s1192_s23  ;;  %v179_v52 = vpop.permute.xlu1 %178  ;;  %v906_v49 = vmul.f32 %v905_v45, %v1219_v2  ;;  %v525_v45 = vstv %s1451_s8  ;;  %s1100_s8 = sld [smem:[#allocation2 + $0x20c]] }
  0xab   :  { %v181_v53 = vadd.f32 %v179_v52, %v173_v50  ;;  %v191_v54 = vpop.permute.xlu0 %190  ;;  %v617_v52 = vstv %s1079_s17  ;;  %s1505_s17 = sld [smem:[#allocation2 + $0x388]] }
  0xac   :  { %v618_v56 = vmul.f32 %v617_v52, %v1219_v2 }
  0xad   :  { %v185_v55 = vadd.f32 %v184_v51, %v181_v53 }
  0xae   :  { %v199_v57 = vpop.permute.xlu1 %198 }
  0xaf   :  { %v193_v58 = vadd.f32 %v191_v54, %v185_v55  ;;  %v207_v59 = vpop.permute.xlu0 %206  ;;  %v394_v54 = vstv %s1389_s18  ;;  %s1510_s18 = sld [smem:[#allocation2 + $0x8c]] }
  0xb1   :  { %v201_v61 = vadd.f32 %v199_v57, %v193_v58 }
  0xb2   :  { %v232_v62 = vpop.permute.xlu1 %231 }
  0xb3   :  { %v209_v63 = vadd.f32 %v207_v59, %v201_v61  ;;  %v224_v1 = vpop.permute.xlu0 %223  ;;  %v853_v59 = vstv %s1111_s19  ;;  %s1522_s19 = sld [smem:[#allocation2 + $0x10c]] }
  0xb4   :  { %v226_v4 = vadd.f32 %v224_v1, %v218_v60  ;;  %v395_v60 = vmul.f32 %v394_v54, %v1217_v0 }
  0xb5   :  { %211 = vrot.lane.b32.xlu1 %v209_v63, %s1194_s27  ;;  %v721_v63 = vstv %s1397_s20  ;;  %s1084_s20 = sld [smem:[#allocation2 + $0x20a]] }
  0xb6   :  { %v252_v5 = vpop.permute.xlu1 %251  ;;  %v234_v6 = vadd.f32 %v232_v62, %v226_v4  ;;  %v854_v62 = vmul.f32 %v853_v59, %v1219_v2  ;;  %v441_v4 = vstv %s1399_s21  ;;  %s1099_s21 = sld [smem:[#allocation2 + $0x18c]] }
  0xb7   :  { %v240_v8 = vpop.permute.xlu0 %239 }
  0xb8   :  { %v242_v9 = vadd.f32 %v240_v8, %v234_v6  ;;  %v722_v8 = vmul.f32 %v721_v63, %v1219_v2 }
  0xba   :  { %v246_v11 = vadd.f32 %v245_v7, %v242_v9  ;;  %v268_v12 = vpop.permute.xlu1 %267  ;;  %v570_v7 = vstv %s1401_s22  ;;  %v442_v9 = vmul.f32 %v441_v4, %v1219_v2  ;;  %s1060_s22 = sld [smem:[#allocation2 + $0x207]] }
  0xbb   :  { %v260_v13 = vpop.permute.xlu0 %259 }
  0xbc   :  { %v254_v15 = vadd.f32 %v252_v5, %v246_v11 }
  0xbe   :  { %v262_v16 = vadd.f32 %v260_v13, %v254_v15  ;;  %v285_v17 = vpop.permute.xlu1 %284  ;;  %v913_v13 = vstv %s1408_s25  ;;  %s1102_s25 = sld [smem:[#allocation2 + $0x30c]] }
  0xbf   :  { %v287_v19 = vadd.f32 %v285_v17, %v279_v14  ;;  %v293_v20 = vpop.permute.xlu0 %292  ;;  %v571_v14 = vmul.f32 %v570_v7, %v1217_v0  ;;  %v958_v17 = vmul.f32 %v957_v10, %v1219_v2  ;;  %v914_v18 = vmul.f32 %v913_v13, %v1219_v2  ;;  %v1513_v10 = vld [vmem:[#allocation6 + $0x2] sm:$0x3] }
  0xc0   :  { %v270_v22 = vadd.f32 %v268_v12, %v262_v16  ;;  %v806_v16 = vstv %s1411_s26  ;;  %s1103_s26 = sld [smem:[#allocation2 + $0x38c]] }
  0xc1   :  { %v295_v23 = vadd.f32 %v293_v20, %v287_v19  ;;  %v669_v19 = vstv %s1416_s28  ;;  %s1076_s28 = sld [smem:[#allocation2 + $0x209]] }
  0xc2   :  { %272 = vrot.lane.b32.xlu0 %v270_v22, %s1193_s24  ;;  %v301_v25 = vpop.permute.xlu1 %300 }
  0xc3   :  { %v303_v27 = vadd.f32 %v301_v25, %v295_v23  ;;  %v313_v28 = vpop.permute.xlu0 %312  ;;  %v807_v23 = vmul.f32 %v806_v16, %v1217_v0  ;;  %v630_v25 = vstv %s1422_s30  ;;  %s1052_s30 = sld [smem:[#allocation2 + $0x206]] }
  0xc4   :  { %v631_v30 = vmul.f32 %v630_v25, %v1217_v0 }
  0xc5   :  { %v307_v31 = vadd.f32 %v306_v24, %v303_v27  ;;  %v737_v24 = vstv %s1419_s29  ;;  %v493_v27 = vstv %s1431_s3  ;;  %s1108_s29 = sld [smem:[#allocation2 + $0x20d]] }
  0xc6   :  { %612 = vrot.lane.b32.xlu0 %v610_v26, %s1194_s27  ;;  %v321_v32 = vpop.permute.xlu1 %320  ;;  %v670_v26 = vmul.f32 %v669_v19, %v1219_v2  ;;  %s1116_s3 = sld [smem:[#allocation2 + $0x20e]] }
  0xc7   :  { %v315_v34 = vadd.f32 %v313_v28, %v307_v31  ;;  %v329_v35 = vpop.permute.xlu0 %328  ;;  %v738_v28 = vmul.f32 %v737_v24, %v1219_v2 }
  0xc9   :  { %v323_v38 = vadd.f32 %v321_v32, %v315_v34  ;;  %v517_v34 = vstv %s1435_s4  ;;  %s1092_s4 = sld [smem:[#allocation2 + $0x20b]] }
  0xca   :  { %848 = vrot.lane.b32.xlu0 %v846_v33, %s1194_s27  ;;  %v341_v39 = vpop.permute.xlu1 %340 }
  0xcb   :  { %v331_v42 = vadd.f32 %v329_v35, %v323_v38  ;;  %v343_v43 = vadd.f32 %v341_v39, %v335_v36  ;;  %v349_v44 = vpop.permute.xlu0 %348  ;;  %v454_v35 = vstv %s1437_s5  ;;  %v494_v36 = vmul.f32 %v493_v27, %v1219_v2  ;;  %s1064_s5 = sld [smem:[#allocation2 + $0x8]] }
  0xcc   :  { %v729_v38 = vstv %s1447_s7  ;;  %s1096_s7 = sld [smem:[#allocation2 + $0xc]] }
  0xcd   :  { %332 = vst.msk [vmem:[#allocation7 + $0x2] sm:$0x3] %vm92_vm0, %v331_v42  ;;  %v351_v46 = vadd.f32 %v349_v44, %v343_v43  ;;  %v455_v42 = vmul.f32 %v454_v35, %v1217_v0 }
  0xce   :  { %436 = vrot.lane.b32.xlu0 %v434_v40, %s1194_s27  ;;  %v357_v48 = vpop.permute.xlu1 %356  ;;  %v518_v40 = vmul.f32 %v517_v34, %v1217_v0  ;;  %v761_v34 = vstv %s1522_s19 }
  0xcf   :  { %v359_v50 = vadd.f32 %v357_v48, %v351_v46  ;;  %v369_v51 = vpop.permute.xlu0 %368  ;;  %v690_v46 = vstv %s1454_s9  ;;  %v730_v48 = vmul.f32 %v729_v38, %v1219_v2  ;;  %v657_v38 = vstv %s1084_s20 }
  0xd1   :  { %v363_v53 = vadd.f32 %v362_v47, %v359_v50  ;;  %v867_v47 = vmul.f32 %v866_v37, %v1217_v0 }
  0xd2   :  { %908 = vrot.lane.b32.xlu0 %v906_v49, %s1194_s27  ;;  %v377_v55 = vpop.permute.xlu1 %376  ;;  %v965_v49 = vstv %s1461_s10 }
  0xd3   :  { %v371_v57 = vadd.f32 %v369_v51, %v363_v53  ;;  %v385_v58 = vpop.permute.xlu0 %384  ;;  %v526_v51 = vmul.f32 %v525_v45, %v1217_v0  ;;  %v691_v53 = vmul.f32 %v690_v46, %v1217_v0  ;;  %v966_v59 = vmul.f32 %v965_v49, %v1219_v2 }
  0xd4   :  { %v481_v45 = vstv %s1060_s22 }
  0xd5   :  { %v379_v61 = vadd.f32 %v377_v55, %v371_v57 }
  0xd6   :  { %620 = vrot.lane.b32.xlu0 %v618_v56, %s1192_s23  ;;  %v409_v1 = vpop.permute.xlu1 %408  ;;  %v533_v56 = vstv %s1465_s11 }
  0xd7   :  { %v387_v3 = vadd.f32 %v385_v58, %v379_v61  ;;  %v401_v5 = vpop.permute.xlu0 %400  ;;  %v926_v58 = vstv %s1468_s12 }
  0xd8   :  { %v403_v6 = vadd.f32 %v401_v5, %v395_v60  ;;  %v677_v60 = vstv %s1475_s13  ;;  %v545_v5 = vstv %s1480_s14 }
  0xd9   :  { %389 = vrot.lane.b32.xlu1 %v387_v3, %s1192_s23  ;;  %v678_v7 = vmul.f32 %v677_v60, %v1219_v2 }
  0xda   :  { %856 = vrot.lane.b32.xlu0 %v854_v62, %s1192_s23  ;;  %v1429_v11 = vadd.f32 %v409_v1, %v403_v6  ;;  %v813_v12 = vpop.permute.xlu1 %812  ;;  %v534_v62 = vmul.f32 %v533_v56, %v1217_v0  ;;  %v927_v1 = vmul.f32 %v926_v58, %v1217_v0  ;;  %v546_v0 = vmul.f32 %v1513_v10, %v545_v5 }
  0xdb   :  { %v577_v15 = vpop.permute.xlu0 %576  ;;  %v815_v32 = vadd.f32 %v813_v12, %v807_v23 }
  0xdc   :  { %v579_v21 = vadd.f32 %v577_v15, %v571_v14  ;;  %v553_v15 = vstv %s1493_s16 }
  0xdd   :  { %724 = vrot.lane.b32.xlu1 %v722_v8, %s1193_s24  ;;  %v501_v8 = vstv %s1487_s15  ;;  %v554_v19 = vmul.f32 %v1513_v10, %v553_v15 }
  0xde   :  { %444 = vrot.lane.b32.xlu0 %v442_v9, %s1192_s23  ;;  %v873_v20 = vpop.permute.xlu1 %872  ;;  %v502_v2 = vmul.f32 %v1513_v10, %v501_v8 }
  0xdf   :  { %v637_v22 = vpop.permute.xlu0 %636  ;;  %v875_v57 = vadd.f32 %v873_v20, %v867_v47 }
  0xe0   :  { %v639_v41 = vadd.f32 %v637_v22, %v631_v30  ;;  %v561_v22 = vstv %s1505_s17 }
  0xe1   :  { %960 = vrot.lane.b32.xlu1 %v958_v17, %s1193_s24  ;;  %v973_v17 = vstv %s1499_s0  ;;  %v562_v27 = vmul.f32 %v1513_v10, %v561_v22 }
  0xe2   :  { %916 = vrot.lane.b32.xlu0 %v914_v18, %s1192_s23  ;;  %v585_v29 = vpop.permute.xlu1 %584  ;;  %v974_v24 = vmul.f32 %v1513_v10, %v973_v17 }
  0xe3   :  { %v461_v31 = vpop.permute.xlu0 %460  ;;  %v587_v33 = vadd.f32 %v585_v29, %v579_v21 }
  0xe4   :  { %v463_v52 = vadd.f32 %v461_v31, %v455_v42  ;;  %v1538_v31 = vld [vmem:[#allocation6] sm:$0x3] }
  0xe5   :  { %672 = vrot.lane.b32.xlu1 %v670_v26, %s1194_s27  ;;  %v753_v26 = vstv %s1510_s18 }
  0xe6   :  { %740 = vrot.lane.b32.xlu0 %v738_v28, %s1192_s23  ;;  %v821_v39 = vpop.permute.xlu1 %820 }
  0xe7   :  { %v697_v43 = vpop.permute.xlu0 %696  ;;  %v823_v44 = vadd.f32 %v821_v39, %v815_v32  ;;  %v754_v32 = vmul.f32 %v1538_v31, %v753_v26 }
  0xe8   :  { %v699_v63 = vadd.f32 %v697_v43, %v691_v53  ;;  %v658_v43 = vmul.f32 %v1513_v10, %v657_v38  ;;  %v789_v53 = vstv %s1102_s25 }
  0xe9   :  { %496 = vrot.lane.b32.xlu1 %v494_v36, %s1194_s27 }
  0xea   :  { %v645_v50 = vpop.permute.xlu1 %644  ;;  %520 = vrot.lane.b32.xlu0 %v518_v40, %s1193_s24  ;;  %v769_v40 = vstv %s1099_s21 }
  0xeb   :  { %v933_v54 = vpop.permute.xlu0 %932  ;;  %v647_v55 = vadd.f32 %v645_v50, %v639_v41  ;;  %v770_v46 = vmul.f32 %v1538_v31, %v769_v40  ;;  %v482_v50 = vmul.f32 %v1513_v10, %v481_v45  ;;  %v717_v40 = vstv %s1092_s4 }
  0xec   :  { %v935_v12 = vadd.f32 %v933_v54, %v927_v1  ;;  %v718_v45 = vmul.f32 %v1513_v10, %v717_v40 }
  0xed   :  { %732 = vrot.lane.b32.xlu1 %v730_v48, %s1194_s27  ;;  %v781_v48 = vstv %s1101_s1 }
  0xee   :  { %v469_v61 = vpop.permute.xlu1 %468  ;;  %528 = vrot.lane.b32.xlu0 %v526_v51, %s1194_s27  ;;  %v782_v51 = vmul.f32 %v1513_v10, %v781_v48 }
  0xef   :  { %v881_v3 = vpop.permute.xlu0 %880  ;;  %v471_v4 = vadd.f32 %v469_v61, %v463_v52 }
  0xf0   :  { %v883_v6 = vadd.f32 %v881_v3, %v875_v57  ;;  %v790_v57 = vmul.f32 %v1513_v10, %v789_v53 }
  0xf1   :  { %968 = vrot.lane.b32.xlu1 %v966_v59, %s1194_s27  ;;  %v797_v59 = vstv %s1103_s26 }
  0xf2   :  { %v705_v9 = vpop.permute.xlu1 %704  ;;  %536 = vrot.lane.b32.xlu0 %v534_v62, %s1192_s23  ;;  %v798_v61 = vmul.f32 %v1513_v10, %v797_v59 }
  0xf3   :  { %v593_v13 = vpop.permute.xlu0 %592  ;;  %v707_v14 = vadd.f32 %v705_v9, %v699_v63  ;;  %v833_v9 = vstv %s1108_s29 }
  0xf4   :  { %v1517_v16 = vadd.f32 %v593_v13, %v587_v33  ;;  %v834_v13 = vmul.f32 %v1513_v10, %v833_v9 }
  0xf5   :  { %680 = vrot.lane.b32.xlu1 %v678_v7, %s1192_s23 }
  0xf6   :  { %v941_v18 = vpop.permute.xlu1 %940  ;;  %548 = vrot.lane.b32.xlu0 %v546_v0, %s1193_s24 }
  0xf7   :  { %v829_v20 = vpop.permute.xlu0 %828  ;;  %v943_v21 = vadd.f32 %v941_v18, %v935_v12 }
  0xf8   :  { %v1527_v23 = vadd.f32 %v829_v20, %v823_v44 }
  0xf9   :  { %504 = vrot.lane.b32.xlu1 %v502_v2, %s1192_s23 }
  0xfa   :  { %v653_v25 = vpop.permute.xlu1 %652  ;;  %556 = vrot.lane.b32.xlu0 %v554_v19, %s1194_s27  ;;  %v835_v18 = vadd.f32 %v834_v13, %v1527_v23  ;;  %v893_v19 = vstv %s1116_s3 }
  0xfb   :  { %v417_v28 = vpop.permute.xlu0 %416  ;;  %v655_v29 = vadd.f32 %v653_v25, %v647_v55  ;;  %v894_v25 = vmul.f32 %v1513_v10, %v893_v19 }
  0xfc   :  { %v1535_v30 = vadd.f32 %v417_v28, %v1429_v11  ;;  %v762_v11 = vmul.f32 %v1538_v31, %v761_v34 }
  0xfd   :  { %976 = vrot.lane.b32.xlu1 %v974_v24, %s1192_s23  ;;  %v659_v49 = vadd.f32 %v658_v43, %v655_v29  ;;  %v514_v43 = vstv %s1064_s5 }
  0xfe   :  { %v477_v33 = vpop.permute.xlu1 %476  ;;  %564 = vrot.lane.b32.xlu0 %v562_v27, %s1192_s23 }
  0xff   :  { %v889_v35 = vpop.permute.xlu0 %888  ;;  %v479_v36 = vadd.f32 %v477_v33, %v471_v4 }
 0x100   :  { %v1543_v37 = vadd.f32 %v889_v35, %v883_v6  ;;  %v597_v6 = vstv %s1076_s28 }
 0x101   :  { %756 = vrot.lane.b32.xlu1 %v754_v32, %s1193_s24  ;;  %v483_v55 = vadd.f32 %v482_v50, %v479_v36  ;;  %v598_v8 = vmul.f32 %v1513_v10, %v597_v6 }
 0x102   :  { %v949_v39 = vpop.permute.xlu1 %948  ;;  %v895_v32 = vadd.f32 %v894_v25, %v1543_v37 }
 0x103   :  { %v713_v41 = vpop.permute.xlu0 %712  ;;  %v1547_v42 = vadd.f32 %v949_v39, %v943_v21  ;;  %v599_v12 = vadd.f32 %v598_v8, %v1517_v16 }
 0x104   :  { %v1550_v44 = vadd.f32 %v713_v41, %v707_v14  ;;  %v421_v14 = vstv %s1052_s30 }
 0x105   :  { %764 = vrot.lane.b32.xlu1 %v762_v11, %s1194_s27  ;;  %v422_v17 = vmul.f32 %v1513_v10, %v421_v14 }
 0x106   :  { %v841_v47 = vpop.permute.xlu1 %840 }
 0x107   :  { %v605_v56 = vpop.permute.xlu0 %604  ;;  %v423_v22 = vadd.f32 %v422_v17, %v1535_v30  ;;  %v843_v24 = vadd.f32 %v841_v47, %v835_v18  ;;  %v515_v47 = vmul.f32 %v1538_v31, %v514_v43  ;;  %v750_v17 = vstv %s1096_s7 }
 0x108   :  { %v607_v2 = vadd.f32 %v605_v56, %v599_v12 }
 0x109   :  { %772 = vrot.lane.b32.xlu1 %v770_v46, %s1192_s23 }
 0x10a   :  { %v665_v52 = vpop.permute.xlu1 %664 }
 0x10b   :  { %v1557_v54 = vadd.f32 %v665_v52, %v659_v49  ;;  %v429_v62 = vpop.permute.xlu0 %428  ;;  %v719_v49 = vadd.f32 %v718_v45, %v1550_v44 }
 0x10c   :  { %v431_v29 = vadd.f32 %v429_v62, %v423_v22 }
 0x10d   :  { %784 = vrot.lane.b32.xlu1 %v782_v51, %s1193_s24 }
 0x10e   :  { %v489_v58 = vpop.permute.xlu1 %488 }
 0x10f   :  { %v1561_v60 = vadd.f32 %v489_v58, %v483_v55  ;;  %v901_v63 = vpop.permute.xlu0 %900 }
 0x110   :  { %v903_v35 = vadd.f32 %v901_v63, %v895_v32 }
 0x111   :  { %792 = vrot.lane.b32.xlu1 %v790_v57, %s1194_s27  ;;  %v541_v57 = vstv %s1068_s6 }
 0x112   :  { %v542_v63 = vmul.f32 %v1513_v10, %v541_v57 }
 0x115   :  { %800 = vrot.lane.b32.xlu1 %v798_v61, %s1192_s23 }
 0x11c   :  { %v151_v1 = vpop.permute.xlu0 %150 }
 0x11d   :  { %154 = vst.msk [vmem:[#allocation7] sm:$0x3] %vm153_vm1, %v151_v1 }
 0x127   :  { %v212_v3 = vpop.permute.xlu1 %211 }
 0x128   :  { %215 = vst.msk [vmem:[#allocation7] sm:$0x3] %vm214_vm2, %v212_v3 }
 0x134   :  { %v273_v4 = vpop.permute.xlu0 %272 }
 0x135   :  { %276 = vst.msk [vmem:[#allocation7] sm:$0x3] %vm275_vm3, %v273_v4 }
 0x138   :  { %v613_v5 = vpop.permute.xlu0 %612 }
 0x139   :  { %v615_v20 = vadd.f32 %v613_v5, %v607_v2 }
 0x13c   :  { %v849_v7 = vpop.permute.xlu0 %848 }
 0x13d   :  { %v851_v27 = vadd.f32 %v849_v7, %v843_v24 }
 0x140   :  { %v437_v0 = vpop.permute.xlu0 %436 }
 0x141   :  { %v439_v33 = vadd.f32 %v437_v0, %v431_v29 }
 0x144   :  { %v909_v15 = vpop.permute.xlu0 %908 }
 0x145   :  { %v911_v38 = vadd.f32 %v909_v15, %v903_v35 }
 0x148   :  { %v621_v21 = vpop.permute.xlu0 %620 }
 0x149   :  { %v623_v26 = vadd.f32 %v621_v21, %v615_v20  ;;  %v751_v21 = vmul.f32 %v1538_v31, %v750_v17 }
 0x14b   :  { %625 = vrot.lane.b32.xlu0 %v623_v26, %s1192_s23  ;;  %v390_v16 = vpop.permute.xlu1 %389  ;;  %v777_v26 = vstv %s1100_s8 }
 0x14c   :  { %392 = vst.msk [vmem:[#allocation7 + $0x2] sm:$0x3] %vm153_vm1, %v390_v16  ;;  %v857_v28 = vpop.permute.xlu0 %856  ;;  %v778_v16 = vmul.f32 %v1513_v10, %v777_v26 }
 0x14d   :  { %v859_v23 = vadd.f32 %v857_v28, %v851_v27 }
 0x14f   :  { %861 = vrot.lane.b32.xlu1 %v859_v23, %s1192_s23  ;;  %v725_v30 = vpop.permute.xlu1 %724  ;;  %s1124_s23 = sld [smem:[#allocation2 + $0x20f]] }
 0x150   :  { %v445_v34 = vpop.permute.xlu0 %444  ;;  %v727_v52 = vadd.f32 %v725_v30, %v719_v49 }
 0x151   :  { %v447_v36 = vadd.f32 %v445_v34, %v439_v33 }
 0x153   :  { %449 = vrot.lane.b32.xlu0 %v447_v36, %s1194_s27  ;;  %v961_v11 = vpop.permute.xlu1 %960 }
 0x154   :  { %v917_v39 = vpop.permute.xlu0 %916 }
 0x155   :  { %v919_v41 = vadd.f32 %v917_v39, %v911_v38  ;;  %v953_v61 = vstv %s1124_s23 }
 0x156   :  { %v954_v44 = vmul.f32 %v1513_v10, %v953_v61 }
 0x157   :  { %921 = vrot.lane.b32.xlu0 %v919_v41, %s1194_s27  ;;  %v673_v37 = vpop.permute.xlu1 %672 }
 0x158   :  { %v741_v46 = vpop.permute.xlu0 %740  ;;  %v675_v4 = vadd.f32 %v673_v37, %v1557_v54  ;;  %v955_v0 = vadd.f32 %v954_v44, %v1547_v42 }
 0x15a   :  { %v963_v14 = vadd.f32 %v961_v11, %v955_v0 }
 0x15b   :  { %v497_v48 = vpop.permute.xlu1 %496 }
 0x15c   :  { %v521_v50 = vpop.permute.xlu0 %520  ;;  %v499_v12 = vadd.f32 %v497_v48, %v1561_v60 }
 0x15d   :  { %v523_v51 = vadd.f32 %v521_v50, %v515_v47 }
 0x15f   :  { %v733_v53 = vpop.permute.xlu1 %732 }
 0x160   :  { %v735_v55 = vadd.f32 %v733_v53, %v727_v52  ;;  %v529_v56 = vpop.permute.xlu0 %528 }
 0x161   :  { %v531_v58 = vadd.f32 %v529_v56, %v523_v51 }
 0x162   :  { %v743_v59 = vadd.f32 %v741_v46, %v735_v55 }
 0x163   :  { %v969_v62 = vpop.permute.xlu1 %968 }
 0x164   :  { %745 = vrot.lane.b32.xlu0 %v743_v59, %s1193_s24  ;;  %v537_v1 = vpop.permute.xlu0 %536  ;;  %v971_v19 = vadd.f32 %v969_v62, %v963_v14 }
 0x165   :  { %v539_v3 = vadd.f32 %v537_v1, %v531_v58 }
 0x167   :  { %v681_v5 = vpop.permute.xlu1 %680  ;;  %v543_v6 = vadd.f32 %v542_v63, %v539_v3 }
 0x168   :  { %v683_v7 = vadd.f32 %v681_v5, %v675_v4  ;;  %v549_v8 = vpop.permute.xlu0 %548 }
 0x169   :  { %v551_v9 = vadd.f32 %v549_v8, %v543_v6 }
 0x16a   :  { %685 = vrot.lane.b32.xlu1 %v683_v7, %s1194_s27 }
 0x16b   :  { %v505_v13 = vpop.permute.xlu1 %504 }
 0x16c   :  { %v507_v15 = vadd.f32 %v505_v13, %v499_v12  ;;  %v557_v2 = vpop.permute.xlu0 %556 }
 0x16d   :  { %v559_v18 = vadd.f32 %v557_v2, %v551_v9 }
 0x16e   :  { %509 = vrot.lane.b32.xlu1 %v507_v15, %s1193_s24 }
 0x16f   :  { %v977_v54 = vpop.permute.xlu1 %976 }
 0x170   :  { %v979_v20 = vadd.f32 %v977_v54, %v971_v19  ;;  %v565_v22 = vpop.permute.xlu0 %564 }
 0x171   :  { %v567_v42 = vadd.f32 %v565_v22, %v559_v18 }
 0x172   :  { %981 = vrot.lane.b32.xlu1 %v979_v20, %s1193_s24  ;;  %s1195_s24 = smov [#allocation7]  }
 0x173   :  { %v757_v60 = vpop.permute.xlu1 %756  ;;  %568 = vst.msk [vmem:[#allocation7 + $0x4] sm:$0x3] %vm92_vm0, %v567_v42  ;;  %s991_s27 = sshll.u32 %s1195_s24, 4  ;;  %s992_s27 = int_to_ptr.vmem [resolvable:$true] %s991_s27 }
 0x174   :  { %v759_v24 = vadd.f32 %v757_v60, %v751_v21  ;;  %s1164_s9 = scalar_lea.vmem %s992_s27, 128  ;;  %p1169_p6 = scmp.lt.s32.totalorder %s992_s27, %s992_s27 }
 0x175   :  { %p1165_p5 = scmp.ne.s32.totalorder %s992_s27, %s1164_s9  ;;  %p1170_p7 = scmp.lt.s32.totalorder %s1164_s9, %s1164_s9 }
 0x177   :  { %v765_v25 = vpop.permute.xlu1 %764  ;;  %p1171_p8 = por %p1170_p7, %p1169_p6 }
 0x178   :  { %v767_v27 = vadd.f32 %v765_v25, %v759_v24 }
 0x179   :  { %p1172_p9 = pnand %p1171_p8, %p1165_p5 }
 0x17b   :  { %v773_v28 = vpop.permute.xlu1 %772 }
 0x17c   :  { %v775_v29 = vadd.f32 %v773_v28, %v767_v27 }
 0x17e   :  { %v779_v32 = vadd.f32 %v778_v16, %v775_v29 }
 0x17f   :  { %v785_v23 = vpop.permute.xlu1 %784 }
 0x180   :  { %v787_v33 = vadd.f32 %v785_v23, %v779_v32 }
 0x183   :  { %v793_v30 = vpop.permute.xlu1 %792 }
 0x184   :  { %v795_v31 = vadd.f32 %v793_v30, %v787_v33 }
 0x187   :  { %v801_v34 = vpop.permute.xlu1 %800 }
 0x188   :  { %v803_v35 = vadd.f32 %v801_v34, %v795_v31 }
 0x18a   :  { %804 = vst.msk [vmem:[#allocation7 + $0x6] sm:$0x3] %vm92_vm0, %v803_v35 }
 0x1bd   :  { %v626_v36 = vpop.permute.xlu0 %625 }
 0x1be   :  { %628 = vst.msk [vmem:[#allocation7 + $0x4] sm:$0x3] %vm153_vm1, %v626_v36 }
 0x1c1   :  { %v862_v38 = vpop.permute.xlu1 %861 }
 0x1c2   :  { %864 = vst.msk [vmem:[#allocation7 + $0x6] sm:$0x3] %vm153_vm1, %v862_v38 }
 0x1c5   :  { %v450_v11 = vpop.permute.xlu0 %449 }
 0x1c6   :  { %452 = vst.msk [vmem:[#allocation7 + $0x2] sm:$0x3] %vm214_vm2, %v450_v11 }
 0x1c9   :  { %v922_v10 = vpop.permute.xlu0 %921 }
 0x1ca   :  { %924 = vst.msk [vmem:[#allocation7 + $0x6] sm:$0x3] %vm214_vm2, %v922_v10 }
 0x1d6   :  { %v746_v40 = vpop.permute.xlu0 %745 }
 0x1dc   :  { %v686_v39 = vpop.permute.xlu1 %685 }
 0x1dd   :  { %688 = vst.msk [vmem:[#allocation7 + $0x4] sm:$0x3] %vm214_vm2, %v686_v39 }
 0x1de   :  { %748 = vst.msk [vmem:[#allocation7 + $0x4] sm:$0x3] %vm275_vm3, %v746_v40 }
 0x1e0   :  { %v510_v41 = vpop.permute.xlu1 %509 }
 0x1e1   :  { %512 = vst.msk [vmem:[#allocation7 + $0x2] sm:$0x3] %vm275_vm3, %v510_v41 }
 0x1e4   :  { %v982_v43 = vpop.permute.xlu1 %981 }
 0x1e5   :  { %984 = vst.msk [vmem:[#allocation7 + $0x6] sm:$0x3] %vm275_vm3, %v982_v43 }
 0x1e6   :  { %1175 = shalt.err (!%p1172_p9)
}
 0x1e7   :  { %994 = dma.vmem_to_hbm [thread:$0]  %s992_s27, 128, %s1611_s2, [#allocation4]  }
 0x1e8   :  { %1188 = dma.done.wait [#allocation4], 128  }
 0x1e9   :  { %1189 = vsyncadd [#allocation4], 4294967168 }
 0x1ea   :  { %998 = vsyncpa [#allocation3], 1 }
 0x1eb   :  { %999 = vsyncpa [#allocation4], 1 }
 0x1ec   :  { %1000 = vsyncpa [#allocation5], 1 }

</bundles_post_ra>
